<compile_context>
chip_gen: v5e
topology: v5e:2x2
jax: 0.10.0
libtpu: 0.0.40
codegen_flags: <defaults>
</compile_context>

<pallas_src>
import functools

import jax
import jax.numpy as jnp
from jax.experimental import pallas as pl
from jax.experimental.pallas import tpu as pltpu


def _mrconv_layer_kernel(adj_ref, hs_ref, hn_ref, ws_ref, wr_ref, b_ref,
                         gamma_ref, beta_ref, o_ref, acc_ref):
    """One (graph, node-tile) block: max-relative aggregation + linear + LayerNorm + ELU."""
    jb = pl.program_id(2)

    h_i = hs_ref[...]                                    # [tN, Din] f32, resident across jb

    # Self-loop guarantees h_i is in N(i): start the running max at h_i itself
    # (removes the near-FLT_MAX sentinel fragility and one full-size select per step).
    @pl.when(jb == 0)
    def _():
        acc_ref[...] = h_i

    adj = adj_ref[...].astype(jnp.float32)               # [tN, tJ] {0,1} mask tile
    h_j = hn_ref[...]                                    # [tJ, Din] neighbor features

    neg = jnp.float32(-1e30)                             # never wins: acc >= h_i already
    masked = jnp.where(adj[:, :, None] > 0.5, h_j[None, :, :], neg)   # [tN, tJ, Din]
    acc_ref[...] = jnp.maximum(acc_ref[...], jnp.max(masked, axis=1))

    @pl.when(jb == pl.num_programs(2) - 1)
    def _():
        rel = acc_ref[...] - h_i                         # max_j (h_j - h_i)
        # Linear(concat([h, rel])) == h @ W_self + rel @ W_rel + b  (bf16 MXU, f32 accumulate)
        y = (jnp.dot(h_i.astype(jnp.bfloat16), ws_ref[...],
                     preferred_element_type=jnp.float32)
             + jnp.dot(rel.astype(jnp.bfloat16), wr_ref[...],
                       preferred_element_type=jnp.float32)
             + b_ref[...])                               # [tN, Dout]
        # LayerNorm (eps=1e-5, affine) over the feature dim.
        mu = jnp.mean(y, axis=-1, keepdims=True)
        var = jnp.mean((y - mu) * (y - mu), axis=-1, keepdims=True)
        yn = (y - mu) * jax.lax.rsqrt(var + jnp.float32(1e-5))
        yn = yn * gamma_ref[...] + beta_ref[...]
        # ELU(alpha=1); clamp the exp argument so the untaken branch stays finite.
        o_ref[...] = jnp.where(yn > 0, yn, jnp.exp(jnp.minimum(yn, 0.0)) - 1.0)


def _pick_tiles(n, d, vmem_budget_bytes=8 * 1024 * 1024):
    """Node-row / neighbor-column tile sizes (multiples of 8/128, or the full extent)."""
    if n <= 128 or n % 128 != 0:
        return n, n                                      # small / odd graphs: one block
    tj = 128
    tn = 512 if n % 512 == 0 else 128
    # Keep the [tn, tj, d] masked intermediate within a conservative VMEM budget
    # (fits comfortably on v5e/v6e 128 MiB and v7x 64 MiB per-TC VMEM).
    while tn > 128 and tn * tj * d * 4 > vmem_budget_bytes:
        tn //= 2
    return tn, tj


def mrconv_layer(adj, h, w_self, w_rel, b, gamma, beta):
    """One MRConv+LayerNorm+ELU layer over ALL graphs in a single gridded pallas_call.

    adj: [G, N, N] {0,1} mask with self loops (bf16 ok); h: [G, N, Din] f32.
    """
    G, N, Din = h.shape
    Dout = w_self.shape[1]
    tn, tj = _pick_tiles(N, Din)
    grid = (G, N // tn, N // tj)

    return pl.pallas_call(
        _mrconv_layer_kernel,
        out_shape=jax.ShapeDtypeStruct((G, N, Dout), jnp.float32),
        grid_spec=pltpu.PrefetchScalarGridSpec(
            num_scalar_prefetch=0,
            grid=grid,
            in_specs=[
                pl.BlockSpec((None, tn, tj), lambda g, nb, jb: (g, nb, jb)),   # adj tile
                pl.BlockSpec((None, tn, Din), lambda g, nb, jb: (g, nb, 0)),   # h rows i
                pl.BlockSpec((None, tj, Din), lambda g, nb, jb: (g, jb, 0)),   # h neighbors j
                pl.BlockSpec((Din, Dout), lambda g, nb, jb: (0, 0)),           # W_self (bf16)
                pl.BlockSpec((Din, Dout), lambda g, nb, jb: (0, 0)),           # W_rel  (bf16)
                pl.BlockSpec((1, Dout), lambda g, nb, jb: (0, 0)),             # bias
                pl.BlockSpec((1, Dout), lambda g, nb, jb: (0, 0)),             # gamma
                pl.BlockSpec((1, Dout), lambda g, nb, jb: (0, 0)),             # beta
            ],
            out_specs=pl.BlockSpec((None, tn, Dout), lambda g, nb, jb: (g, nb, 0)),
            scratch_shapes=[pltpu.VMEM((tn, Din), jnp.float32)],               # running max
        ),
        compiler_params=pltpu.CompilerParams(
            dimension_semantics=("parallel", "parallel", "arbitrary"),
            vmem_limit_bytes=32 * 1024 * 1024,
        ),
    )(adj, h, h, w_self, w_rel, b, gamma, beta)


def init_simple_mrconv_params(key, in_dim, hidden_dim, out_dim, num_layers):
    """Deterministic parameter init mirroring the module's layer structure."""
    dims = [in_dim] + [hidden_dim] * (num_layers - 1) + [out_dim]
    params = []
    for l in range(num_layers):
        din, dout = dims[l], dims[l + 1]
        key, k1, k2, k3 = jax.random.split(key, 4)
        scale = 1.0 / jnp.sqrt(jnp.float32(2 * din))
        params.append(dict(
            w_self=jax.random.normal(k1, (din, dout), jnp.float32) * scale,
            w_rel=jax.random.normal(k2, (din, dout), jnp.float32) * scale,
            b=jax.random.normal(k3, (1, dout), jnp.float32) * 0.01,
            gamma=jnp.ones((1, dout), jnp.float32),
            beta=jnp.zeros((1, dout), jnp.float32),
        ))
    return params


@jax.jit
def simple_mrconv_forward(adj_batch, feat_batch, params):
    """adj_batch: [G, N, N] dense {0,1} adjacency with self loops; feat_batch: [G, N, in_dim].

    Returns (updated node features [G, N, out_dim], mean-pooled features [G, out_dim]).
    """
    adj_b = adj_batch.astype(jnp.bfloat16)   # narrower mask -> half the adj HBM traffic
    h = feat_batch.astype(jnp.float32)
    # TODO(synk): fuse all layers into one pallas_call (stacked / padded weights, layer as an
    # 'arbitrary' grid axis) so adj and h stay VMEM-resident across layers; also pad Dout to a
    # lane-dense multiple of 128 for unmasked stores.
    for p in params:
        h = mrconv_layer(adj_b, h,
                         p["w_self"].astype(jnp.bfloat16),
                         p["w_rel"].astype(jnp.bfloat16),
                         p["b"], p["gamma"], p["beta"])
    pooled = jnp.mean(h, axis=1)             # hg = torch.mean(h, dim=0), per graph
    return h, pooled


def _reference_forward(adj, feats, params):
    """Pure-JAX reference with identical (bf16-matmul) numerics, for a correctness check."""
    outs = []
    for g in range(adj.shape[0]):
        hg, a = feats[g], adj[g]
        for p in params:
            masked = jnp.where(a[:, :, None] > 0.5, hg[None, :, :], jnp.float32(-1e30))
            rel = jnp.max(masked, axis=1) - hg
            y = (jnp.dot(hg.astype(jnp.bfloat16), p["w_self"].astype(jnp.bfloat16),
                         preferred_element_type=jnp.float32)
                 + jnp.dot(rel.astype(jnp.bfloat16), p["w_rel"].astype(jnp.bfloat16),
                           preferred_element_type=jnp.float32)
                 + p["b"])
            mu = jnp.mean(y, axis=-1, keepdims=True)
            var = jnp.mean((y - mu) * (y - mu), axis=-1, keepdims=True)
            yn = (y - mu) * jax.lax.rsqrt(var + 1e-5) * p["gamma"] + p["beta"]
            hg = jnp.where(yn > 0, yn, jnp.exp(jnp.minimum(yn, 0.0)) - 1.0)
        outs.append(hg)
    return jnp.stack(outs, axis=0)


if __name__ == "__main__":
    # Small, forward-consistent shapes: 2 graphs, 16 nodes each.
    G, N = 2, 16
    in_dim, hidden_dim, out_dim, num_layers = 8, 32, 16, 3

    key = jax.random.PRNGKey(0)
    key, k_feat, k_adj, k_par = jax.random.split(key, 4)

    feats = jax.random.normal(k_feat, (G, N, in_dim), jnp.float32)

    # Random undirected adjacency + self loops (dgl.add_self_loop).
    rnd = jax.random.uniform(k_adj, (G, N, N))
    adj = (rnd < 0.25).astype(jnp.float32)
    adj = jnp.maximum(adj, jnp.transpose(adj, (0, 2, 1)))          # symmetrize
    adj = jnp.maximum(adj, jnp.eye(N, dtype=jnp.float32)[None])    # self loops

    params = init_simple_mrconv_params(k_par, in_dim, hidden_dim, out_dim, num_layers)

    updated_feats, pooled = simple_mrconv_forward(adj, feats, params)
    jax.block_until_ready(updated_feats)
    jax.block_until_ready(pooled)

    assert updated_feats.shape == (G, N, out_dim)
    assert pooled.shape == (G, out_dim)
    assert bool(jnp.all(jnp.isfinite(updated_feats)))

    ref = _reference_forward(adj, feats, params)
    max_err = float(jnp.max(jnp.abs(updated_feats - ref)))
    assert bool(jnp.allclose(updated_feats, ref, atol=1e-2, rtol=1e-2)), max_err

    print("KERNEL_OK")
</pallas_src>

<mosaic_0001>
module attributes {stable_mosaic.version = 11 : i64} {
  func.func @_mrconv_layer_kernel(%arg0: i32, %arg1: i32, %arg2: i32, %arg3: memref<1x16x16xbf16, #tpu.memory_space<vmem>>, %arg4: memref<1x16x8xf32, #tpu.memory_space<vmem>>, %arg5: memref<1x16x8xf32, #tpu.memory_space<vmem>>, %arg6: memref<8x32xbf16, #tpu.memory_space<vmem>>, %arg7: memref<8x32xbf16, #tpu.memory_space<vmem>>, %arg8: memref<1x32xf32, #tpu.memory_space<vmem>>, %arg9: memref<1x32xf32, #tpu.memory_space<vmem>>, %arg10: memref<1x32xf32, #tpu.memory_space<vmem>>, %arg11: memref<1x16x32xf32, #tpu.memory_space<vmem>>, %arg12: memref<16x8xf32, #tpu.memory_space<vmem>>) attributes {dimension_semantics = [#tpu.dimension_semantics<parallel>, #tpu.dimension_semantics<parallel>, #tpu.dimension_semantics<arbitrary>], iteration_bounds = array<i64: 2, 1, 1>, scalar_prefetch = 0 : i64, scratch_operands = 1 : i64, tpu.core_type = #tpu.core_type<tc>, window_params = [{transform_indices = @transform_0, window_bounds = array<i64: 1, 16, 16>}, {transform_indices = @transform_1, window_bounds = array<i64: 1, 16, 8>}, {transform_indices = @transform_2, window_bounds = array<i64: 1, 16, 8>}, {pipeline_mode = #tpu.pipeline_mode<synchronous>, transform_indices = @transform_3, window_bounds = array<i64: 8, 32>}, {pipeline_mode = #tpu.pipeline_mode<synchronous>, transform_indices = @transform_4, window_bounds = array<i64: 8, 32>}, {pipeline_mode = #tpu.pipeline_mode<synchronous>, transform_indices = @transform_5, window_bounds = array<i64: 1, 32>}, {pipeline_mode = #tpu.pipeline_mode<synchronous>, transform_indices = @transform_6, window_bounds = array<i64: 1, 32>}, {pipeline_mode = #tpu.pipeline_mode<synchronous>, transform_indices = @transform_7, window_bounds = array<i64: 1, 32>}, {transform_indices = @transform_8, window_bounds = array<i64: 1, 16, 32>}]} {
    %c0 = arith.constant 0 : index
    %c0_0 = arith.constant 0 : index
    %c0_1 = arith.constant 0 : index
    %0 = vector.load %arg4[%c0, %c0_0, %c0_1] : memref<1x16x8xf32, #tpu.memory_space<vmem>>, vector<1x16x8xf32>
    %1 = vector.shape_cast %0 : vector<1x16x8xf32> to vector<16x8xf32>
    %c0_i32 = arith.constant 0 : i32
    %2 = arith.cmpi eq, %arg2, %c0_i32 : i32
    %3 = arith.extui %2 : i1 to i32
    %c0_i32_2 = arith.constant 0 : i32
    %4 = arith.cmpi ne, %3, %c0_i32_2 : i32
    scf.if %4 {
      %c0_17 = arith.constant 0 : index
      %c0_18 = arith.constant 0 : index
      %27 = vector.load %arg12[%c0_17, %c0_18] : memref<16x8xf32, #tpu.memory_space<vmem>>, vector<16x8xf32>
      tpu.vector_store %arg12[%c0_17, %c0_18], %1 {strides = array<i32>} : memref<16x8xf32, #tpu.memory_space<vmem>>, vector<16x8xf32>,
    } else {
    }
    %c0_3 = arith.constant 0 : index
    %c0_4 = arith.constant 0 : index
    %c0_5 = arith.constant 0 : index
    %5 = vector.load %arg3[%c0_3, %c0_4, %c0_5] : memref<1x16x16xbf16, #tpu.memory_space<vmem>>, vector<1x16x16xbf16>
    %6 = vector.shape_cast %5 : vector<1x16x16xbf16> to vector<16x16xbf16>
    %7 = arith.extf %6 : vector<16x16xbf16> to vector<16x16xf32>
    %c0_6 = arith.constant 0 : index
    %c0_7 = arith.constant 0 : index
    %c0_8 = arith.constant 0 : index
    %8 = vector.load %arg5[%c0_6, %c0_7, %c0_8] : memref<1x16x8xf32, #tpu.memory_space<vmem>>, vector<1x16x8xf32>
    %9 = vector.shape_cast %8 : vector<1x16x8xf32> to vector<16x8xf32>
    %10 = vector.shape_cast %7 : vector<16x16xf32> to vector<16x16x1xf32>
    %cst = arith.constant 5.000000e-01 : f32
    %11 = vector.broadcast %cst : f32 to vector<16x16x1xf32>
    %12 = arith.cmpf ogt, %10, %11 : vector<16x16x1xf32>
    %13 = vector.shape_cast %9 : vector<16x8xf32> to vector<1x16x8xf32>
    %cst_9 = arith.constant -1.000000e+30 : f32
    %14 = vector.shape_cast %12 : vector<16x16x1xi1> to vector<16x16x1xi1>
    %15 = vector.broadcast %14 : vector<16x16x1xi1> to vector<16x16x8xi1>
    %16 = vector.shape_cast %13 : vector<1x16x8xf32> to vector<1x16x8xf32>
    %17 = vector.broadcast %16 : vector<1x16x8xf32> to vector<16x16x8xf32>
    %18 = vector.broadcast %cst_9 : f32 to vector<16x16x8xf32>
    %19 = arith.select %15, %17, %18 : vector<16x16x8xi1>, vector<16x16x8xf32>
    %c0_10 = arith.constant 0 : index
    %c0_11 = arith.constant 0 : index
    %20 = vector.load %arg12[%c0_10, %c0_11] : memref<16x8xf32, #tpu.memory_space<vmem>>, vector<16x8xf32>
    %cst_12 = arith.constant dense<0xFF800000> : vector<16x8xf32>
    %21 = vector.multi_reduction <maximumf>, %19, %cst_12 [1] : vector<16x16x8xf32> to vector<16x8xf32>
    %22 = arith.maximumf %20, %21 : vector<16x8xf32>
    %c0_13 = arith.constant 0 : index
    %c0_14 = arith.constant 0 : index
    %23 = vector.load %arg12[%c0_13, %c0_14] : memref<16x8xf32, #tpu.memory_space<vmem>>, vector<16x8xf32>
    tpu.vector_store %arg12[%c0_13, %c0_14], %22 {strides = array<i32>} : memref<16x8xf32, #tpu.memory_space<vmem>>, vector<16x8xf32>,
    %c0_i32_15 = arith.constant 0 : i32
    %24 = arith.cmpi eq, %arg2, %c0_i32_15 : i32
    %25 = arith.extui %24 : i1 to i32
    %c0_i32_16 = arith.constant 0 : i32
    %26 = arith.cmpi ne, %25, %c0_i32_16 : i32
    scf.if %26 {
      %c0_17 = arith.constant 0 : index
      %c0_18 = arith.constant 0 : index
      %27 = vector.load %arg12[%c0_17, %c0_18] : memref<16x8xf32, #tpu.memory_space<vmem>>, vector<16x8xf32>
      %28 = arith.subf %27, %1 : vector<16x8xf32>
      %29 = arith.truncf %1 : vector<16x8xf32> to vector<16x8xbf16>
      %c0_19 = arith.constant 0 : index
      %c0_20 = arith.constant 0 : index
      %30 = vector.load %arg6[%c0_19, %c0_20] : memref<8x32xbf16, #tpu.memory_space<vmem>>, vector<8x32xbf16>
      %cst_21 = arith.constant dense<0.000000e+00> : vector<16x32xf32>
      %31 = tpu.matmul %29, %30, %cst_21 {dimension_numbers = #tpu.dot_dimension_numbers<[1], [0], [0], [1], [0, 0, 1, 1], [], []>} : vector<16x8xbf16>, vector<8x32xbf16>, vector<16x32xf32> -> vector<16x32xf32>
      %32 = arith.truncf %28 : vector<16x8xf32> to vector<16x8xbf16>
      %c0_22 = arith.constant 0 : index
      %c0_23 = arith.constant 0 : index
      %33 = vector.load %arg7[%c0_22, %c0_23] : memref<8x32xbf16, #tpu.memory_space<vmem>>, vector<8x32xbf16>
      %cst_24 = arith.constant dense<0.000000e+00> : vector<16x32xf32>
      %34 = tpu.matmul %32, %33, %cst_24 {dimension_numbers = #tpu.dot_dimension_numbers<[1], [0], [0], [1], [0, 0, 1, 1], [], []>} : vector<16x8xbf16>, vector<8x32xbf16>, vector<16x32xf32> -> vector<16x32xf32>
      %35 = arith.addf %31, %34 : vector<16x32xf32>
      %c0_25 = arith.constant 0 : index
      %c0_26 = arith.constant 0 : index
      %36 = vector.load %arg8[%c0_25, %c0_26] : memref<1x32xf32, #tpu.memory_space<vmem>>, vector<1x32xf32>
      %37 = vector.broadcast %36 : vector<1x32xf32> to vector<16x32xf32>
      %38 = arith.addf %35, %37 : vector<16x32xf32>
      %cst_27 = arith.constant dense<0.000000e+00> : vector<16xf32>
      %39 = vector.multi_reduction <add>, %38, %cst_27 [1] : vector<16x32xf32> to vector<16xf32>
      %40 = vector.shape_cast %39 : vector<16xf32> to vector<16x1xf32>
      %cst_28 = arith.constant 3.200000e+01 : f32
      %41 = vector.broadcast %cst_28 : f32 to vector<16x1xf32>
      %42 = arith.divf %40, %41 : vector<16x1xf32>
      %43 = vector.broadcast %42 : vector<16x1xf32> to vector<16x32xf32>
      %44 = arith.subf %38, %43 : vector<16x32xf32>
      %45 = vector.broadcast %42 : vector<16x1xf32> to vector<16x32xf32>
      %46 = arith.subf %38, %45 : vector<16x32xf32>
      %47 = arith.mulf %44, %46 : vector<16x32xf32>
      %cst_29 = arith.constant dense<0.000000e+00> : vector<16xf32>
      %48 = vector.multi_reduction <add>, %47, %cst_29 [1] : vector<16x32xf32> to vector<16xf32>
      %49 = vector.shape_cast %48 : vector<16xf32> to vector<16x1xf32>
      %cst_30 = arith.constant 3.200000e+01 : f32
      %50 = vector.broadcast %cst_30 : f32 to vector<16x1xf32>
      %51 = arith.divf %49, %50 : vector<16x1xf32>
      %52 = vector.broadcast %42 : vector<16x1xf32> to vector<16x32xf32>
      %53 = arith.subf %38, %52 : vector<16x32xf32>
      %cst_31 = arith.constant 9.99999974E-6 : f32
      %54 = vector.broadcast %cst_31 : f32 to vector<16x1xf32>
      %55 = arith.addf %51, %54 : vector<16x1xf32>
      %56 = math.rsqrt %55 : vector<16x1xf32>
      %57 = vector.broadcast %56 : vector<16x1xf32> to vector<16x32xf32>
      %58 = arith.mulf %53, %57 : vector<16x32xf32>
      %c0_32 = arith.constant 0 : index
      %c0_33 = arith.constant 0 : index
      %59 = vector.load %arg9[%c0_32, %c0_33] : memref<1x32xf32, #tpu.memory_space<vmem>>, vector<1x32xf32>
      %60 = vector.broadcast %59 : vector<1x32xf32> to vector<16x32xf32>
      %61 = arith.mulf %58, %60 : vector<16x32xf32>
      %c0_34 = arith.constant 0 : index
      %c0_35 = arith.constant 0 : index
      %62 = vector.load %arg10[%c0_34, %c0_35] : memref<1x32xf32, #tpu.memory_space<vmem>>, vector<1x32xf32>
      %63 = vector.broadcast %62 : vector<1x32xf32> to vector<16x32xf32>
      %64 = arith.addf %61, %63 : vector<16x32xf32>
      %cst_36 = arith.constant 0.000000e+00 : f32
      %65 = vector.broadcast %cst_36 : f32 to vector<16x32xf32>
      %66 = arith.cmpf ogt, %64, %65 : vector<16x32xf32>
      %cst_37 = arith.constant 0.000000e+00 : f32
      %67 = vector.broadcast %cst_37 : f32 to vector<16x32xf32>
      %68 = arith.minimumf %64, %67 : vector<16x32xf32>
      %69 = math.exp %68 : vector<16x32xf32>
      %cst_38 = arith.constant 1.000000e+00 : f32
      %70 = vector.broadcast %cst_38 : f32 to vector<16x32xf32>
      %71 = arith.subf %69, %70 : vector<16x32xf32>
      %72 = arith.select %66, %64, %71 : vector<16x32xi1>, vector<16x32xf32>
      %c0_39 = arith.constant 0 : index
      %c0_40 = arith.constant 0 : index
      %c0_41 = arith.constant 0 : index
      %73 = vector.load %arg11[%c0_39, %c0_40, %c0_41] : memref<1x16x32xf32, #tpu.memory_space<vmem>>, vector<1x16x32xf32>
      %74 = vector.shape_cast %73 : vector<1x16x32xf32> to vector<16x32xf32>
      %75 = vector.shape_cast %72 : vector<16x32xf32> to vector<1x16x32xf32>
      tpu.vector_store %arg11[%c0_39, %c0_40, %c0_41], %75 {strides = array<i32>} : memref<1x16x32xf32, #tpu.memory_space<vmem>>, vector<1x16x32xf32>,
    } else {
    }
    return
  }
  func.func @transform_0(%arg0: i32, %arg1: i32, %arg2: i32) -> (i32, i32, i32) {
    %c0_i32 = arith.constant 0 : i32
    return %arg0, %arg1, %arg2 : i32, i32, i32
  }
  func.func @transform_1(%arg0: i32, %arg1: i32, %arg2: i32) -> (i32, i32, i32) {
    %c0_i32 = arith.constant 0 : i32
    %c0_i32_0 = arith.constant 0 : i32
    return %arg0, %arg1, %c0_i32 : i32, i32, i32
  }
  func.func @transform_2(%arg0: i32, %arg1: i32, %arg2: i32) -> (i32, i32, i32) {
    %c0_i32 = arith.constant 0 : i32
    %c0_i32_0 = arith.constant 0 : i32
    return %arg0, %arg2, %c0_i32 : i32, i32, i32
  }
  func.func @transform_3(%arg0: i32, %arg1: i32, %arg2: i32) -> (i32, i32) {
    %c0_i32 = arith.constant 0 : i32
    %c0_i32_0 = arith.constant 0 : i32
    %c0_i32_1 = arith.constant 0 : i32
    return %c0_i32, %c0_i32_0 : i32, i32
  }
  func.func @transform_4(%arg0: i32, %arg1: i32, %arg2: i32) -> (i32, i32) {
    %c0_i32 = arith.constant 0 : i32
    %c0_i32_0 = arith.constant 0 : i32
    %c0_i32_1 = arith.constant 0 : i32
    return %c0_i32, %c0_i32_0 : i32, i32
  }
  func.func @transform_5(%arg0: i32, %arg1: i32, %arg2: i32) -> (i32, i32) {
    %c0_i32 = arith.constant 0 : i32
    %c0_i32_0 = arith.constant 0 : i32
    %c0_i32_1 = arith.constant 0 : i32
    return %c0_i32, %c0_i32_0 : i32, i32
  }
  func.func @transform_6(%arg0: i32, %arg1: i32, %arg2: i32) -> (i32, i32) {
    %c0_i32 = arith.constant 0 : i32
    %c0_i32_0 = arith.constant 0 : i32
    %c0_i32_1 = arith.constant 0 : i32
    return %c0_i32, %c0_i32_0 : i32, i32
  }
  func.func @transform_7(%arg0: i32, %arg1: i32, %arg2: i32) -> (i32, i32) {
    %c0_i32 = arith.constant 0 : i32
    %c0_i32_0 = arith.constant 0 : i32
    %c0_i32_1 = arith.constant 0 : i32
    return %c0_i32, %c0_i32_0 : i32, i32
  }
  func.func @transform_8(%arg0: i32, %arg1: i32, %arg2: i32) -> (i32, i32, i32) {
    %c0_i32 = arith.constant 0 : i32
    %c0_i32_0 = arith.constant 0 : i32
    return %arg0, %arg1, %c0_i32 : i32, i32, i32
  }
}

module attributes {stable_mosaic.version = 11 : i64} {
  func.func @_mrconv_layer_kernel(%arg0: i32, %arg1: i32, %arg2: i32, %arg3: memref<1x16x16xbf16, #tpu.memory_space<vmem>>, %arg4: memref<1x16x32xf32, #tpu.memory_space<vmem>>, %arg5: memref<1x16x32xf32, #tpu.memory_space<vmem>>, %arg6: memref<32x32xbf16, #tpu.memory_space<vmem>>, %arg7: memref<32x32xbf16, #tpu.memory_space<vmem>>, %arg8: memref<1x32xf32, #tpu.memory_space<vmem>>, %arg9: memref<1x32xf32, #tpu.memory_space<vmem>>, %arg10: memref<1x32xf32, #tpu.memory_space<vmem>>, %arg11: memref<1x16x32xf32, #tpu.memory_space<vmem>>, %arg12: memref<16x32xf32, #tpu.memory_space<vmem>>) attributes {dimension_semantics = [#tpu.dimension_semantics<parallel>, #tpu.dimension_semantics<parallel>, #tpu.dimension_semantics<arbitrary>], iteration_bounds = array<i64: 2, 1, 1>, scalar_prefetch = 0 : i64, scratch_operands = 1 : i64, tpu.core_type = #tpu.core_type<tc>, window_params = [{transform_indices = @transform_0, window_bounds = array<i64: 1, 16, 16>}, {transform_indices = @transform_1, window_bounds = array<i64: 1, 16, 32>}, {transform_indices = @transform_2, window_bounds = array<i64: 1, 16, 32>}, {pipeline_mode = #tpu.pipeline_mode<synchronous>, transform_indices = @transform_3, window_bounds = array<i64: 32, 32>}, {pipeline_mode = #tpu.pipeline_mode<synchronous>, transform_indices = @transform_4, window_bounds = array<i64: 32, 32>}, {pipeline_mode = #tpu.pipeline_mode<synchronous>, transform_indices = @transform_5, window_bounds = array<i64: 1, 32>}, {pipeline_mode = #tpu.pipeline_mode<synchronous>, transform_indices = @transform_6, window_bounds = array<i64: 1, 32>}, {pipeline_mode = #tpu.pipeline_mode<synchronous>, transform_indices = @transform_7, window_bounds = array<i64: 1, 32>}, {transform_indices = @transform_8, window_bounds = array<i64: 1, 16, 32>}]} {
    %c0 = arith.constant 0 : index
    %c0_0 = arith.constant 0 : index
    %c0_1 = arith.constant 0 : index
    %0 = vector.load %arg4[%c0, %c0_0, %c0_1] : memref<1x16x32xf32, #tpu.memory_space<vmem>>, vector<1x16x32xf32>
    %1 = vector.shape_cast %0 : vector<1x16x32xf32> to vector<16x32xf32>
    %c0_i32 = arith.constant 0 : i32
    %2 = arith.cmpi eq, %arg2, %c0_i32 : i32
    %3 = arith.extui %2 : i1 to i32
    %c0_i32_2 = arith.constant 0 : i32
    %4 = arith.cmpi ne, %3, %c0_i32_2 : i32
    scf.if %4 {
      %c0_17 = arith.constant 0 : index
      %c0_18 = arith.constant 0 : index
      %27 = vector.load %arg12[%c0_17, %c0_18] : memref<16x32xf32, #tpu.memory_space<vmem>>, vector<16x32xf32>
      tpu.vector_store %arg12[%c0_17, %c0_18], %1 {strides = array<i32>} : memref<16x32xf32, #tpu.memory_space<vmem>>, vector<16x32xf32>,
    } else {
    }
    %c0_3 = arith.constant 0 : index
    %c0_4 = arith.constant 0 : index
    %c0_5 = arith.constant 0 : index
    %5 = vector.load %arg3[%c0_3, %c0_4, %c0_5] : memref<1x16x16xbf16, #tpu.memory_space<vmem>>, vector<1x16x16xbf16>
    %6 = vector.shape_cast %5 : vector<1x16x16xbf16> to vector<16x16xbf16>
    %7 = arith.extf %6 : vector<16x16xbf16> to vector<16x16xf32>
    %c0_6 = arith.constant 0 : index
    %c0_7 = arith.constant 0 : index
    %c0_8 = arith.constant 0 : index
    %8 = vector.load %arg5[%c0_6, %c0_7, %c0_8] : memref<1x16x32xf32, #tpu.memory_space<vmem>>, vector<1x16x32xf32>
    %9 = vector.shape_cast %8 : vector<1x16x32xf32> to vector<16x32xf32>
    %10 = vector.shape_cast %7 : vector<16x16xf32> to vector<16x16x1xf32>
    %cst = arith.constant 5.000000e-01 : f32
    %11 = vector.broadcast %cst : f32 to vector<16x16x1xf32>
    %12 = arith.cmpf ogt, %10, %11 : vector<16x16x1xf32>
    %13 = vector.shape_cast %9 : vector<16x32xf32> to vector<1x16x32xf32>
    %cst_9 = arith.constant -1.000000e+30 : f32
    %14 = vector.shape_cast %12 : vector<16x16x1xi1> to vector<16x16x1xi1>
    %15 = vector.broadcast %14 : vector<16x16x1xi1> to vector<16x16x32xi1>
    %16 = vector.shape_cast %13 : vector<1x16x32xf32> to vector<1x16x32xf32>
    %17 = vector.broadcast %16 : vector<1x16x32xf32> to vector<16x16x32xf32>
    %18 = vector.broadcast %cst_9 : f32 to vector<16x16x32xf32>
    %19 = arith.select %15, %17, %18 : vector<16x16x32xi1>, vector<16x16x32xf32>
    %c0_10 = arith.constant 0 : index
    %c0_11 = arith.constant 0 : index
    %20 = vector.load %arg12[%c0_10, %c0_11] : memref<16x32xf32, #tpu.memory_space<vmem>>, vector<16x32xf32>
    %cst_12 = arith.constant dense<0xFF800000> : vector<16x32xf32>
    %21 = vector.multi_reduction <maximumf>, %19, %cst_12 [1] : vector<16x16x32xf32> to vector<16x32xf32>
    %22 = arith.maximumf %20, %21 : vector<16x32xf32>
    %c0_13 = arith.constant 0 : index
    %c0_14 = arith.constant 0 : index
    %23 = vector.load %arg12[%c0_13, %c0_14] : memref<16x32xf32, #tpu.memory_space<vmem>>, vector<16x32xf32>
    tpu.vector_store %arg12[%c0_13, %c0_14], %22 {strides = array<i32>} : memref<16x32xf32, #tpu.memory_space<vmem>>, vector<16x32xf32>,
    %c0_i32_15 = arith.constant 0 : i32
    %24 = arith.cmpi eq, %arg2, %c0_i32_15 : i32
    %25 = arith.extui %24 : i1 to i32
    %c0_i32_16 = arith.constant 0 : i32
    %26 = arith.cmpi ne, %25, %c0_i32_16 : i32
    scf.if %26 {
      %c0_17 = arith.constant 0 : index
      %c0_18 = arith.constant 0 : index
      %27 = vector.load %arg12[%c0_17, %c0_18] : memref<16x32xf32, #tpu.memory_space<vmem>>, vector<16x32xf32>
      %28 = arith.subf %27, %1 : vector<16x32xf32>
      %29 = arith.truncf %1 : vector<16x32xf32> to vector<16x32xbf16>
      %c0_19 = arith.constant 0 : index
      %c0_20 = arith.constant 0 : index
      %30 = vector.load %arg6[%c0_19, %c0_20] : memref<32x32xbf16, #tpu.memory_space<vmem>>, vector<32x32xbf16>
      %cst_21 = arith.constant dense<0.000000e+00> : vector<16x32xf32>
      %31 = tpu.matmul %29, %30, %cst_21 {dimension_numbers = #tpu.dot_dimension_numbers<[1], [0], [0], [1], [0, 0, 1, 1], [], []>} : vector<16x32xbf16>, vector<32x32xbf16>, vector<16x32xf32> -> vector<16x32xf32>
      %32 = arith.truncf %28 : vector<16x32xf32> to vector<16x32xbf16>
      %c0_22 = arith.constant 0 : index
      %c0_23 = arith.constant 0 : index
      %33 = vector.load %arg7[%c0_22, %c0_23] : memref<32x32xbf16, #tpu.memory_space<vmem>>, vector<32x32xbf16>
      %cst_24 = arith.constant dense<0.000000e+00> : vector<16x32xf32>
      %34 = tpu.matmul %32, %33, %cst_24 {dimension_numbers = #tpu.dot_dimension_numbers<[1], [0], [0], [1], [0, 0, 1, 1], [], []>} : vector<16x32xbf16>, vector<32x32xbf16>, vector<16x32xf32> -> vector<16x32xf32>
      %35 = arith.addf %31, %34 : vector<16x32xf32>
      %c0_25 = arith.constant 0 : index
      %c0_26 = arith.constant 0 : index
      %36 = vector.load %arg8[%c0_25, %c0_26] : memref<1x32xf32, #tpu.memory_space<vmem>>, vector<1x32xf32>
      %37 = vector.broadcast %36 : vector<1x32xf32> to vector<16x32xf32>
      %38 = arith.addf %35, %37 : vector<16x32xf32>
      %cst_27 = arith.constant dense<0.000000e+00> : vector<16xf32>
      %39 = vector.multi_reduction <add>, %38, %cst_27 [1] : vector<16x32xf32> to vector<16xf32>
      %40 = vector.shape_cast %39 : vector<16xf32> to vector<16x1xf32>
      %cst_28 = arith.constant 3.200000e+01 : f32
      %41 = vector.broadcast %cst_28 : f32 to vector<16x1xf32>
      %42 = arith.divf %40, %41 : vector<16x1xf32>
      %43 = vector.broadcast %42 : vector<16x1xf32> to vector<16x32xf32>
      %44 = arith.subf %38, %43 : vector<16x32xf32>
      %45 = vector.broadcast %42 : vector<16x1xf32> to vector<16x32xf32>
      %46 = arith.subf %38, %45 : vector<16x32xf32>
      %47 = arith.mulf %44, %46 : vector<16x32xf32>
      %cst_29 = arith.constant dense<0.000000e+00> : vector<16xf32>
      %48 = vector.multi_reduction <add>, %47, %cst_29 [1] : vector<16x32xf32> to vector<16xf32>
      %49 = vector.shape_cast %48 : vector<16xf32> to vector<16x1xf32>
      %cst_30 = arith.constant 3.200000e+01 : f32
      %50 = vector.broadcast %cst_30 : f32 to vector<16x1xf32>
      %51 = arith.divf %49, %50 : vector<16x1xf32>
      %52 = vector.broadcast %42 : vector<16x1xf32> to vector<16x32xf32>
      %53 = arith.subf %38, %52 : vector<16x32xf32>
      %cst_31 = arith.constant 9.99999974E-6 : f32
      %54 = vector.broadcast %cst_31 : f32 to vector<16x1xf32>
      %55 = arith.addf %51, %54 : vector<16x1xf32>
      %56 = math.rsqrt %55 : vector<16x1xf32>
      %57 = vector.broadcast %56 : vector<16x1xf32> to vector<16x32xf32>
      %58 = arith.mulf %53, %57 : vector<16x32xf32>
      %c0_32 = arith.constant 0 : index
      %c0_33 = arith.constant 0 : index
      %59 = vector.load %arg9[%c0_32, %c0_33] : memref<1x32xf32, #tpu.memory_space<vmem>>, vector<1x32xf32>
      %60 = vector.broadcast %59 : vector<1x32xf32> to vector<16x32xf32>
      %61 = arith.mulf %58, %60 : vector<16x32xf32>
      %c0_34 = arith.constant 0 : index
      %c0_35 = arith.constant 0 : index
      %62 = vector.load %arg10[%c0_34, %c0_35] : memref<1x32xf32, #tpu.memory_space<vmem>>, vector<1x32xf32>
      %63 = vector.broadcast %62 : vector<1x32xf32> to vector<16x32xf32>
      %64 = arith.addf %61, %63 : vector<16x32xf32>
      %cst_36 = arith.constant 0.000000e+00 : f32
      %65 = vector.broadcast %cst_36 : f32 to vector<16x32xf32>
      %66 = arith.cmpf ogt, %64, %65 : vector<16x32xf32>
      %cst_37 = arith.constant 0.000000e+00 : f32
      %67 = vector.broadcast %cst_37 : f32 to vector<16x32xf32>
      %68 = arith.minimumf %64, %67 : vector<16x32xf32>
      %69 = math.exp %68 : vector<16x32xf32>
      %cst_38 = arith.constant 1.000000e+00 : f32
      %70 = vector.broadcast %cst_38 : f32 to vector<16x32xf32>
      %71 = arith.subf %69, %70 : vector<16x32xf32>
      %72 = arith.select %66, %64, %71 : vector<16x32xi1>, vector<16x32xf32>
      %c0_39 = arith.constant 0 : index
      %c0_40 = arith.constant 0 : index
      %c0_41 = arith.constant 0 : index
      %73 = vector.load %arg11[%c0_39, %c0_40, %c0_41] : memref<1x16x32xf32, #tpu.memory_space<vmem>>, vector<1x16x32xf32>
      %74 = vector.shape_cast %73 : vector<1x16x32xf32> to vector<16x32xf32>
      %75 = vector.shape_cast %72 : vector<16x32xf32> to vector<1x16x32xf32>
      tpu.vector_store %arg11[%c0_39, %c0_40, %c0_41], %75 {strides = array<i32>} : memref<1x16x32xf32, #tpu.memory_space<vmem>>, vector<1x16x32xf32>,
    } else {
    }
    return
  }
  func.func @transform_0(%arg0: i32, %arg1: i32, %arg2: i32) -> (i32, i32, i32) {
    %c0_i32 = arith.constant 0 : i32
    return %arg0, %arg1, %arg2 : i32, i32, i32
  }
  func.func @transform_1(%arg0: i32, %arg1: i32, %arg2: i32) -> (i32, i32, i32) {
    %c0_i32 = arith.constant 0 : i32
    %c0_i32_0 = arith.constant 0 : i32
    return %arg0, %arg1, %c0_i32 : i32, i32, i32
  }
  func.func @transform_2(%arg0: i32, %arg1: i32, %arg2: i32) -> (i32, i32, i32) {
    %c0_i32 = arith.constant 0 : i32
    %c0_i32_0 = arith.constant 0 : i32
    return %arg0, %arg2, %c0_i32 : i32, i32, i32
  }
  func.func @transform_3(%arg0: i32, %arg1: i32, %arg2: i32) -> (i32, i32) {
    %c0_i32 = arith.constant 0 : i32
    %c0_i32_0 = arith.constant 0 : i32
    %c0_i32_1 = arith.constant 0 : i32
    return %c0_i32, %c0_i32_0 : i32, i32
  }
  func.func @transform_4(%arg0: i32, %arg1: i32, %arg2: i32) -> (i32, i32) {
    %c0_i32 = arith.constant 0 : i32
    %c0_i32_0 = arith.constant 0 : i32
    %c0_i32_1 = arith.constant 0 : i32
    return %c0_i32, %c0_i32_0 : i32, i32
  }
  func.func @transform_5(%arg0: i32, %arg1: i32, %arg2: i32) -> (i32, i32) {
    %c0_i32 = arith.constant 0 : i32
    %c0_i32_0 = arith.constant 0 : i32
    %c0_i32_1 = arith.constant 0 : i32
    return %c0_i32, %c0_i32_0 : i32, i32
  }
  func.func @transform_6(%arg0: i32, %arg1: i32, %arg2: i32) -> (i32, i32) {
    %c0_i32 = arith.constant 0 : i32
    %c0_i32_0 = arith.constant 0 : i32
    %c0_i32_1 = arith.constant 0 : i32
    return %c0_i32, %c0_i32_0 : i32, i32
  }
  func.func @transform_7(%arg0: i32, %arg1: i32, %arg2: i32) -> (i32, i32) {
    %c0_i32 = arith.constant 0 : i32
    %c0_i32_0 = arith.constant 0 : i32
    %c0_i32_1 = arith.constant 0 : i32
    return %c0_i32, %c0_i32_0 : i32, i32
  }
  func.func @transform_8(%arg0: i32, %arg1: i32, %arg2: i32) -> (i32, i32, i32) {
    %c0_i32 = arith.constant 0 : i32
    %c0_i32_0 = arith.constant 0 : i32
    return %arg0, %arg1, %c0_i32 : i32, i32, i32
  }
}

module attributes {stable_mosaic.version = 11 : i64} {
  func.func @_mrconv_layer_kernel(%arg0: i32, %arg1: i32, %arg2: i32, %arg3: memref<1x16x16xbf16, #tpu.memory_space<vmem>>, %arg4: memref<1x16x32xf32, #tpu.memory_space<vmem>>, %arg5: memref<1x16x32xf32, #tpu.memory_space<vmem>>, %arg6: memref<32x16xbf16, #tpu.memory_space<vmem>>, %arg7: memref<32x16xbf16, #tpu.memory_space<vmem>>, %arg8: memref<1x16xf32, #tpu.memory_space<vmem>>, %arg9: memref<1x16xf32, #tpu.memory_space<vmem>>, %arg10: memref<1x16xf32, #tpu.memory_space<vmem>>, %arg11: memref<1x16x16xf32, #tpu.memory_space<vmem>>, %arg12: memref<16x32xf32, #tpu.memory_space<vmem>>) attributes {dimension_semantics = [#tpu.dimension_semantics<parallel>, #tpu.dimension_semantics<parallel>, #tpu.dimension_semantics<arbitrary>], iteration_bounds = array<i64: 2, 1, 1>, scalar_prefetch = 0 : i64, scratch_operands = 1 : i64, tpu.core_type = #tpu.core_type<tc>, window_params = [{transform_indices = @transform_0, window_bounds = array<i64: 1, 16, 16>}, {transform_indices = @transform_1, window_bounds = array<i64: 1, 16, 32>}, {transform_indices = @transform_2, window_bounds = array<i64: 1, 16, 32>}, {pipeline_mode = #tpu.pipeline_mode<synchronous>, transform_indices = @transform_3, window_bounds = array<i64: 32, 16>}, {pipeline_mode = #tpu.pipeline_mode<synchronous>, transform_indices = @transform_4, window_bounds = array<i64: 32, 16>}, {pipeline_mode = #tpu.pipeline_mode<synchronous>, transform_indices = @transform_5, window_bounds = array<i64: 1, 16>}, {pipeline_mode = #tpu.pipeline_mode<synchronous>, transform_indices = @transform_6, window_bounds = array<i64: 1, 16>}, {pipeline_mode = #tpu.pipeline_mode<synchronous>, transform_indices = @transform_7, window_bounds = array<i64: 1, 16>}, {transform_indices = @transform_8, window_bounds = array<i64: 1, 16, 16>}]} {
    %c0 = arith.constant 0 : index
    %c0_0 = arith.constant 0 : index
    %c0_1 = arith.constant 0 : index
    %0 = vector.load %arg4[%c0, %c0_0, %c0_1] : memref<1x16x32xf32, #tpu.memory_space<vmem>>, vector<1x16x32xf32>
    %1 = vector.shape_cast %0 : vector<1x16x32xf32> to vector<16x32xf32>
    %c0_i32 = arith.constant 0 : i32
    %2 = arith.cmpi eq, %arg2, %c0_i32 : i32
    %3 = arith.extui %2 : i1 to i32
    %c0_i32_2 = arith.constant 0 : i32
    %4 = arith.cmpi ne, %3, %c0_i32_2 : i32
    scf.if %4 {
      %c0_17 = arith.constant 0 : index
      %c0_18 = arith.constant 0 : index
      %27 = vector.load %arg12[%c0_17, %c0_18] : memref<16x32xf32, #tpu.memory_space<vmem>>, vector<16x32xf32>
      tpu.vector_store %arg12[%c0_17, %c0_18], %1 {strides = array<i32>} : memref<16x32xf32, #tpu.memory_space<vmem>>, vector<16x32xf32>,
    } else {
    }
    %c0_3 = arith.constant 0 : index
    %c0_4 = arith.constant 0 : index
    %c0_5 = arith.constant 0 : index
    %5 = vector.load %arg3[%c0_3, %c0_4, %c0_5] : memref<1x16x16xbf16, #tpu.memory_space<vmem>>, vector<1x16x16xbf16>
    %6 = vector.shape_cast %5 : vector<1x16x16xbf16> to vector<16x16xbf16>
    %7 = arith.extf %6 : vector<16x16xbf16> to vector<16x16xf32>
    %c0_6 = arith.constant 0 : index
    %c0_7 = arith.constant 0 : index
    %c0_8 = arith.constant 0 : index
    %8 = vector.load %arg5[%c0_6, %c0_7, %c0_8] : memref<1x16x32xf32, #tpu.memory_space<vmem>>, vector<1x16x32xf32>
    %9 = vector.shape_cast %8 : vector<1x16x32xf32> to vector<16x32xf32>
    %10 = vector.shape_cast %7 : vector<16x16xf32> to vector<16x16x1xf32>
    %cst = arith.constant 5.000000e-01 : f32
    %11 = vector.broadcast %cst : f32 to vector<16x16x1xf32>
    %12 = arith.cmpf ogt, %10, %11 : vector<16x16x1xf32>
    %13 = vector.shape_cast %9 : vector<16x32xf32> to vector<1x16x32xf32>
    %cst_9 = arith.constant -1.000000e+30 : f32
    %14 = vector.shape_cast %12 : vector<16x16x1xi1> to vector<16x16x1xi1>
    %15 = vector.broadcast %14 : vector<16x16x1xi1> to vector<16x16x32xi1>
    %16 = vector.shape_cast %13 : vector<1x16x32xf32> to vector<1x16x32xf32>
    %17 = vector.broadcast %16 : vector<1x16x32xf32> to vector<16x16x32xf32>
    %18 = vector.broadcast %cst_9 : f32 to vector<16x16x32xf32>
    %19 = arith.select %15, %17, %18 : vector<16x16x32xi1>, vector<16x16x32xf32>
    %c0_10 = arith.constant 0 : index
    %c0_11 = arith.constant 0 : index
    %20 = vector.load %arg12[%c0_10, %c0_11] : memref<16x32xf32, #tpu.memory_space<vmem>>, vector<16x32xf32>
    %cst_12 = arith.constant dense<0xFF800000> : vector<16x32xf32>
    %21 = vector.multi_reduction <maximumf>, %19, %cst_12 [1] : vector<16x16x32xf32> to vector<16x32xf32>
    %22 = arith.maximumf %20, %21 : vector<16x32xf32>
    %c0_13 = arith.constant 0 : index
    %c0_14 = arith.constant 0 : index
    %23 = vector.load %arg12[%c0_13, %c0_14] : memref<16x32xf32, #tpu.memory_space<vmem>>, vector<16x32xf32>
    tpu.vector_store %arg12[%c0_13, %c0_14], %22 {strides = array<i32>} : memref<16x32xf32, #tpu.memory_space<vmem>>, vector<16x32xf32>,
    %c0_i32_15 = arith.constant 0 : i32
    %24 = arith.cmpi eq, %arg2, %c0_i32_15 : i32
    %25 = arith.extui %24 : i1 to i32
    %c0_i32_16 = arith.constant 0 : i32
    %26 = arith.cmpi ne, %25, %c0_i32_16 : i32
    scf.if %26 {
      %c0_17 = arith.constant 0 : index
      %c0_18 = arith.constant 0 : index
      %27 = vector.load %arg12[%c0_17, %c0_18] : memref<16x32xf32, #tpu.memory_space<vmem>>, vector<16x32xf32>
      %28 = arith.subf %27, %1 : vector<16x32xf32>
      %29 = arith.truncf %1 : vector<16x32xf32> to vector<16x32xbf16>
      %c0_19 = arith.constant 0 : index
      %c0_20 = arith.constant 0 : index
      %30 = vector.load %arg6[%c0_19, %c0_20] : memref<32x16xbf16, #tpu.memory_space<vmem>>, vector<32x16xbf16>
      %cst_21 = arith.constant dense<0.000000e+00> : vector<16x16xf32>
      %31 = tpu.matmul %29, %30, %cst_21 {dimension_numbers = #tpu.dot_dimension_numbers<[1], [0], [0], [1], [0, 0, 1, 1], [], []>} : vector<16x32xbf16>, vector<32x16xbf16>, vector<16x16xf32> -> vector<16x16xf32>
      %32 = arith.truncf %28 : vector<16x32xf32> to vector<16x32xbf16>
      %c0_22 = arith.constant 0 : index
      %c0_23 = arith.constant 0 : index
      %33 = vector.load %arg7[%c0_22, %c0_23] : memref<32x16xbf16, #tpu.memory_space<vmem>>, vector<32x16xbf16>
      %cst_24 = arith.constant dense<0.000000e+00> : vector<16x16xf32>
      %34 = tpu.matmul %32, %33, %cst_24 {dimension_numbers = #tpu.dot_dimension_numbers<[1], [0], [0], [1], [0, 0, 1, 1], [], []>} : vector<16x32xbf16>, vector<32x16xbf16>, vector<16x16xf32> -> vector<16x16xf32>
      %35 = arith.addf %31, %34 : vector<16x16xf32>
      %c0_25 = arith.constant 0 : index
      %c0_26 = arith.constant 0 : index
      %36 = vector.load %arg8[%c0_25, %c0_26] : memref<1x16xf32, #tpu.memory_space<vmem>>, vector<1x16xf32>
      %37 = vector.broadcast %36 : vector<1x16xf32> to vector<16x16xf32>
      %38 = arith.addf %35, %37 : vector<16x16xf32>
      %cst_27 = arith.constant dense<0.000000e+00> : vector<16xf32>
      %39 = vector.multi_reduction <add>, %38, %cst_27 [1] : vector<16x16xf32> to vector<16xf32>
      %40 = vector.shape_cast %39 : vector<16xf32> to vector<16x1xf32>
      %cst_28 = arith.constant 1.600000e+01 : f32
      %41 = vector.broadcast %cst_28 : f32 to vector<16x1xf32>
      %42 = arith.divf %40, %41 : vector<16x1xf32>
      %43 = vector.broadcast %42 : vector<16x1xf32> to vector<16x16xf32>
      %44 = arith.subf %38, %43 : vector<16x16xf32>
      %45 = vector.broadcast %42 : vector<16x1xf32> to vector<16x16xf32>
      %46 = arith.subf %38, %45 : vector<16x16xf32>
      %47 = arith.mulf %44, %46 : vector<16x16xf32>
      %cst_29 = arith.constant dense<0.000000e+00> : vector<16xf32>
      %48 = vector.multi_reduction <add>, %47, %cst_29 [1] : vector<16x16xf32> to vector<16xf32>
      %49 = vector.shape_cast %48 : vector<16xf32> to vector<16x1xf32>
      %cst_30 = arith.constant 1.600000e+01 : f32
      %50 = vector.broadcast %cst_30 : f32 to vector<16x1xf32>
      %51 = arith.divf %49, %50 : vector<16x1xf32>
      %52 = vector.broadcast %42 : vector<16x1xf32> to vector<16x16xf32>
      %53 = arith.subf %38, %52 : vector<16x16xf32>
      %cst_31 = arith.constant 9.99999974E-6 : f32
      %54 = vector.broadcast %cst_31 : f32 to vector<16x1xf32>
      %55 = arith.addf %51, %54 : vector<16x1xf32>
      %56 = math.rsqrt %55 : vector<16x1xf32>
      %57 = vector.broadcast %56 : vector<16x1xf32> to vector<16x16xf32>
      %58 = arith.mulf %53, %57 : vector<16x16xf32>
      %c0_32 = arith.constant 0 : index
      %c0_33 = arith.constant 0 : index
      %59 = vector.load %arg9[%c0_32, %c0_33] : memref<1x16xf32, #tpu.memory_space<vmem>>, vector<1x16xf32>
      %60 = vector.broadcast %59 : vector<1x16xf32> to vector<16x16xf32>
      %61 = arith.mulf %58, %60 : vector<16x16xf32>
      %c0_34 = arith.constant 0 : index
      %c0_35 = arith.constant 0 : index
      %62 = vector.load %arg10[%c0_34, %c0_35] : memref<1x16xf32, #tpu.memory_space<vmem>>, vector<1x16xf32>
      %63 = vector.broadcast %62 : vector<1x16xf32> to vector<16x16xf32>
      %64 = arith.addf %61, %63 : vector<16x16xf32>
      %cst_36 = arith.constant 0.000000e+00 : f32
      %65 = vector.broadcast %cst_36 : f32 to vector<16x16xf32>
      %66 = arith.cmpf ogt, %64, %65 : vector<16x16xf32>
      %cst_37 = arith.constant 0.000000e+00 : f32
      %67 = vector.broadcast %cst_37 : f32 to vector<16x16xf32>
      %68 = arith.minimumf %64, %67 : vector<16x16xf32>
      %69 = math.exp %68 : vector<16x16xf32>
      %cst_38 = arith.constant 1.000000e+00 : f32
      %70 = vector.broadcast %cst_38 : f32 to vector<16x16xf32>
      %71 = arith.subf %69, %70 : vector<16x16xf32>
      %72 = arith.select %66, %64, %71 : vector<16x16xi1>, vector<16x16xf32>
      %c0_39 = arith.constant 0 : index
      %c0_40 = arith.constant 0 : index
      %c0_41 = arith.constant 0 : index
      %73 = vector.load %arg11[%c0_39, %c0_40, %c0_41] : memref<1x16x16xf32, #tpu.memory_space<vmem>>, vector<1x16x16xf32>
      %74 = vector.shape_cast %73 : vector<1x16x16xf32> to vector<16x16xf32>
      %75 = vector.shape_cast %72 : vector<16x16xf32> to vector<1x16x16xf32>
      tpu.vector_store %arg11[%c0_39, %c0_40, %c0_41], %75 {strides = array<i32>} : memref<1x16x16xf32, #tpu.memory_space<vmem>>, vector<1x16x16xf32>,
    } else {
    }
    return
  }
  func.func @transform_0(%arg0: i32, %arg1: i32, %arg2: i32) -> (i32, i32, i32) {
    %c0_i32 = arith.constant 0 : i32
    return %arg0, %arg1, %arg2 : i32, i32, i32
  }
  func.func @transform_1(%arg0: i32, %arg1: i32, %arg2: i32) -> (i32, i32, i32) {
    %c0_i32 = arith.constant 0 : i32
    %c0_i32_0 = arith.constant 0 : i32
    return %arg0, %arg1, %c0_i32 : i32, i32, i32
  }
  func.func @transform_2(%arg0: i32, %arg1: i32, %arg2: i32) -> (i32, i32, i32) {
    %c0_i32 = arith.constant 0 : i32
    %c0_i32_0 = arith.constant 0 : i32
    return %arg0, %arg2, %c0_i32 : i32, i32, i32
  }
  func.func @transform_3(%arg0: i32, %arg1: i32, %arg2: i32) -> (i32, i32) {
    %c0_i32 = arith.constant 0 : i32
    %c0_i32_0 = arith.constant 0 : i32
    %c0_i32_1 = arith.constant 0 : i32
    return %c0_i32, %c0_i32_0 : i32, i32
  }
  func.func @transform_4(%arg0: i32, %arg1: i32, %arg2: i32) -> (i32, i32) {
    %c0_i32 = arith.constant 0 : i32
    %c0_i32_0 = arith.constant 0 : i32
    %c0_i32_1 = arith.constant 0 : i32
    return %c0_i32, %c0_i32_0 : i32, i32
  }
  func.func @transform_5(%arg0: i32, %arg1: i32, %arg2: i32) -> (i32, i32) {
    %c0_i32 = arith.constant 0 : i32
    %c0_i32_0 = arith.constant 0 : i32
    %c0_i32_1 = arith.constant 0 : i32
    return %c0_i32, %c0_i32_0 : i32, i32
  }
  func.func @transform_6(%arg0: i32, %arg1: i32, %arg2: i32) -> (i32, i32) {
    %c0_i32 = arith.constant 0 : i32
    %c0_i32_0 = arith.constant 0 : i32
    %c0_i32_1 = arith.constant 0 : i32
    return %c0_i32, %c0_i32_0 : i32, i32
  }
  func.func @transform_7(%arg0: i32, %arg1: i32, %arg2: i32) -> (i32, i32) {
    %c0_i32 = arith.constant 0 : i32
    %c0_i32_0 = arith.constant 0 : i32
    %c0_i32_1 = arith.constant 0 : i32
    return %c0_i32, %c0_i32_0 : i32, i32
  }
  func.func @transform_8(%arg0: i32, %arg1: i32, %arg2: i32) -> (i32, i32, i32) {
    %c0_i32 = arith.constant 0 : i32
    %c0_i32_0 = arith.constant 0 : i32
    return %arg0, %arg1, %c0_i32 : i32, i32, i32
  }
}

</mosaic_0001>

<bundles_post_ra>
// kernel: simple_mrconv_forward.4
= control target key start
LH: loop header
LB: loop body
LE: loop exit
PB: predicated region body
PF: predicated region fallthrough
CT: control target
= control target key end

     0   :  { %s1510_s27 = smov 0   ;;  %s1512_s28 = smov 0   ;;  %s1836_s0 = inlined_call_operand.vmem [shape: bf16[2,16,16], index: 0, kind: input, shape index: {}]   ;;  %s1837_s1 = inlined_call_operand.vmem [shape: f32[2,16,32], index: 1, kind: input, shape index: {}, may-alias: {1,2}]   ;;  %s1838_s2 = inlined_call_operand.vmem [shape: f32[2,16,32], index: 2, kind: input, shape index: {}, may-alias: {1,2}]   ;;  %s1839_s3 = inlined_call_operand.vmem [shape: bf16[32,32], index: 3, kind: input, shape index: {}]   ;;  %s1840_s4 = inlined_call_operand.vmem [shape: bf16[32,32], index: 4, kind: input, shape index: {}]   ;;  %s1841_s5 = inlined_call_operand.vmem [shape: f32[1,32], index: 5, kind: input, shape index: {}]   ;;  %s1842_s6 = inlined_call_operand.vmem [shape: f32[1,32], index: 6, kind: input, shape index: {}]   ;;  %s1843_s7 = inlined_call_operand.vmem [shape: f32[1,32], index: 7, kind: input, shape index: {}]   ;;  %s1844_s8 = inlined_call_operand.vmem [shape: f32[2,16,32], index: 8, kind: output, shape index: {}]  }
   0x1   :  { %s1514_s29 = smov 0  }
   0x2 LB: > { %s37_s30 = sadd.s32 1, %s1458_s28  ;;  %p1268_p0 = scmp.ge.s32.totalorder %s1462_s29, 1  ;;  %s1462_s29 = sphi %s1514_s29, %s18_s29   ;;  %s1458_s28 = sphi %s1512_s28, %s1894_s28   ;;  %s1454_s27 = sphi %s1510_s27, %s1893_s27  }
   0x3   : > { %p39_p1 = scmp.ge.s32.totalorder %s37_s30, 2  ;;  %p329_p2 = scmp.lt.s32.totalorder %s1462_s29, 3 }
   0x5   : > { %s1896_s30 = smov (%p39_p1, %s37_s30), 0  ;;  %p330_p3 = pnand %p1268_p0, %p329_p2 }
   0x6   : > { %p393_p4 = scmp.lt.s32.totalorder (!%p330_p3), %s1454_s27, 1 }
   0x7   : > { %333 = sbr.rel (%p330_p3) target bundleno = 667 (0x29b), region = 52 }
   0xc   : > { %v452_v0 = vlaneseq  ;;  %s1898_s27 = smov (!%p393_p4, %s1454_s27), 1  ;;  %vm442_vm4 = vcmask 261120  }
   0xd   : > { %s1299_s9 = sshll.u32 %s1898_s27, 3  ;;  %s1535_s13 = sshll.u32 %s1898_s27, 4 }
   0xe   : > { %v453_v1 = vshrl.u32 %v452_v0, 7  ;;  %s403_s12 = scalar_lea.vmem %s1836_s0, %s1299_s9  ;;  %s423_s16 = scalar_lea.vmem %s1838_s2, %s1535_s13 }
   0xf   : > { %v1308_v2 = vld [vmem:[%s403_s12] sm:$0xff]   ;;  %v1541_v38 = vld [vmem:[%s423_s16 + $0x8] sm:$0xff]  ;;  %s413_s19 = scalar_lea.vmem %s1837_s1, %s1535_s13  ;;  %s433_s18 = scalar_lea.vmem %s1844_s8, %s1535_s13 }
  0x10   : > { %1342 = vset.pattern.permute.xlu1 %v453_v1  ;;  %1336 = vset.pattern.permute.xlu0 %v453_v1  ;;  %v1310_v3 = vunpack.c.h.bf16 %v1308_v2  ;;  %v1309_v4 = vunpack.c.l.bf16 %v1308_v2  ;;  %v460_v16 = vadd.s32 8, %v453_v1  ;;  %v1543_v39 = vld [vmem:[%s423_s16] sm:$0xff] }
  0x11   : > { %1348 = vset.pattern.permute.xlu2 %v453_v1 }
  0x12   : > { %v555_v5 = vperm.slane %v1310_v3, 0  ;;  %v568_v6 = vperm.slane %v1310_v3, 1  ;;  %v451_v7 = vperm.slane %v1309_v4, 0  ;;  %v464_v8 = vperm.slane %v1309_v4, 1 }
  0x13   : > { %v477_v9 = vperm.slane %v1309_v4, 2  ;;  %v581_v10 = vperm.slane %v1310_v3, 2  ;;  %v503_v14 = vperm.slane %v1309_v4, 4  ;;  %v607_v15 = vperm.slane %v1310_v3, 4 }
  0x14   : > { %v1343_v11 = vpack.i.bf16 %v568_v6, %v555_v5  ;;  %v1337_v12 = vpack.i.bf16 %v464_v8, %v451_v7  ;;  %v490_v18 = vperm.slane %v1309_v4, 3  ;;  %v594_v19 = vperm.slane %v1310_v3, 3 }
  0x15   : > { %v1349_v13 = vpack.i.bf16 %v581_v10, %v477_v9  ;;  %v1377_v17 = vpack.i.bf16 %v607_v15, %v503_v14  ;;  %v529_v21 = vperm.slane %v1309_v4, 6  ;;  %v633_v22 = vperm.slane %v1310_v3, 6 }
  0x16   : > { %v1372_v20 = vpack.i.bf16 %v594_v19, %v490_v18  ;;  %v542_v24 = vperm.slane %v1309_v4, 7  ;;  %v646_v25 = vperm.slane %v1310_v3, 7  ;;  %v516_v27 = vperm.slane %v1309_v4, 5 }
  0x17   : > { %v1410_v23 = vpack.i.bf16 %v633_v22, %v529_v21  ;;  %v620_v28 = vperm.slane %v1310_v3, 5 }
  0x18   : > { %1344 = vperm.xlu1 %1342, %v1343_v11   ;;  %1338 = vperm.xlu0 %1336, %v1337_v12   ;;  %v1416_v26 = vpack.i.bf16 %v646_v25, %v542_v24 }
  0x19   : > { %1350 = vperm.xlu2 %1348, %v1349_v13   ;;  %v1395_v29 = vpack.i.bf16 %v620_v28, %v516_v27 }
  0x20   : > { %1354 = vset.pattern.permute.xlu1 %v460_v16  ;;  %1378 = vperm.xlu0 %1336, %v1377_v17  }
  0x21   : > { %1366 = vset.pattern.permute.xlu2 %v460_v16 }
  0x28   : > { %1356 = vperm.xlu1 %1354, %v1343_v11   ;;  %1382 = vset.pattern.permute.xlu0 %v460_v16 }
  0x29   : > { %1368 = vperm.xlu2 %1366, %v1349_v13  }
  0x30   : > { %1360 = vset.pattern.permute.xlu1 %v453_v1  ;;  %1384 = vperm.xlu0 %1382, %v1337_v12  }
  0x31   : > { %1373 = vperm.xlu2 %1366, %v1372_v20  }
  0x38   : > { %1362 = vperm.xlu1 %1360, %v1372_v20   ;;  %1411 = vperm.xlu0 %1382, %v1410_v23  }
  0x39   : > { %1394 = vset.pattern.permute.xlu2 %v453_v1 }
  0x40   : > { %1388 = vset.pattern.permute.xlu1 %v460_v16 }
  0x41   : > { %1396 = vperm.xlu2 %1394, %v1395_v29  }
  0x48   : > { %1390 = vperm.xlu1 %1388, %v1377_v17  }
  0x49   : > { %1406 = vperm.xlu2 %1394, %v1410_v23  }
  0x50   : > { %1401 = vperm.xlu1 %1388, %v1395_v29  }
  0x51   : > { %1421 = vset.pattern.permute.xlu2 %v460_v16 }
  0x58   : > { %1415 = vset.pattern.permute.xlu1 %v453_v1 }
  0x59   : > { %1423 = vperm.xlu2 %1421, %v1416_v26  }
  0x60   : > { %1417 = vperm.xlu1 %1415, %v1416_v26  }
  0x73   : > { %v1351_v30 = vpop.permute.xlu2 %1350 }
  0x74   : > { %v1353_v33 = vunpack.i.h.bf16 %v1351_v30  ;;  %v1352_v34 = vunpack.i.l.bf16 %v1351_v30 }
  0x76   : > { %vm679_vm0 = vcmp.gt.f32.partialorder %v1353_v33, 0.5  ;;  %vm663_vm1 = vcmp.gt.f32.partialorder %v1352_v34, 0.5 }
  0x77   : > { %v775_v40 = vsel %vm679_vm0, %v1543_v39, -1e+30  ;;  %v759_v42 = vsel %vm663_vm1, %v1543_v39, -1e+30 }
  0x78   : > { %v880_v46 = vsel %vm442_vm4, %v775_v40, -inf  ;;  %v808_v47 = vsel %vm442_vm4, %v759_v42, -inf }
  0x83   : > { %v1369_v32 = vpop.permute.xlu2 %1368 }
  0x84   : > { %v1371_v35 = vunpack.i.h.bf16 %v1369_v32  ;;  %v1370_v36 = vunpack.i.l.bf16 %v1369_v32 }
  0x86   : > { %vm680_vm2 = vcmp.gt.f32.partialorder %v1371_v35, 0.5  ;;  %vm664_vm3 = vcmp.gt.f32.partialorder %v1370_v36, 0.5 }
  0x87   : > { %v776_v43 = vsel %vm680_vm2, %v1541_v38, -1e+30  ;;  %v760_v44 = vsel %vm664_vm3, %v1541_v38, -1e+30 }
  0x88   : > { %v881_v48 = vsel %vm442_vm4, %v776_v43, -inf  ;;  %v809_v49 = vsel %vm442_vm4, %v760_v44, -inf }
  0x89   : > { %v810_v53 = vmax.f32 %v808_v47, %v809_v49  ;;  %v882_v54 = vmax.f32 %v880_v46, %v881_v48 }
  0x8a   : > { %v1339_v31 = vpop.permute.xlu0 %1338  ;;  %v1345_v37 = vpop.permute.xlu1 %1344 }
  0x8b   : > { %v1374_v51 = vpop.permute.xlu2 %1373  ;;  %v1346_v52 = vunpack.i.l.bf16 %v1345_v37  ;;  %v1347_v56 = vunpack.i.h.bf16 %v1345_v37  ;;  %v811_v60 = vrot.slane %v810_v53, 4  ;;  %v883_v61 = vrot.slane %v882_v54, 4 }
  0x8c   : > { %v1341_v62 = vunpack.i.h.bf16 %v1339_v31  ;;  %v1340_v1 = vunpack.i.l.bf16 %v1339_v31  ;;  %v1376_v12 = vunpack.i.h.bf16 %v1374_v51  ;;  %v1375_v13 = vunpack.i.l.bf16 %v1374_v51  ;;  %v1713_v31 = vld [vmem:[%s413_s19] sm:$0xff] }
  0x8d   : > { %vm1557_vm6 = vcmp.gt.f32.partialorder %v1346_v52, 0.5  ;;  %vm1565_vm8 = vcmp.gt.f32.partialorder %v1347_v56, 0.5  ;;  %v812_v7 = vmax.f32 %v810_v53, %v811_v60  ;;  %v884_v8 = vmax.f32 %v882_v54, %v883_v61  ;;  %443 = vst.msk [vmem:[#allocation2] sm:$0xff] %vm442_vm4, %v1713_v31 }
  0x8e   : > { %v771_v4 = vsel %vm1557_vm6, %v1543_v39, -1e+30  ;;  %v773_v10 = vsel %vm1565_vm8, %v1543_v39, -1e+30  ;;  %vm1583_vm9 = vcmp.gt.f32.partialorder %v1341_v62, 0.5  ;;  %vm1587_vm10 = vcmp.gt.f32.partialorder %v1340_v1, 0.5 }
  0x8f   : > { %v862_v14 = vsel %vm442_vm4, %v771_v4, -inf  ;;  %v871_v22 = vsel %vm442_vm4, %v773_v10, -inf  ;;  %v813_v23 = vrot.slane %v812_v7, 2  ;;  %v885_v24 = vrot.slane %v884_v8, 2 }
  0x90   : > { %v757_v26 = vsel %vm1583_vm9, %v1543_v39, -1e+30  ;;  %v755_v27 = vsel %vm1587_vm10, %v1543_v39, -1e+30  ;;  %vm1610_vm13 = vcmp.gt.f32.partialorder %v1376_v12, 0.5  ;;  %vm1614_vm14 = vcmp.gt.f32.partialorder %v1375_v13, 0.5 }
  0x91   : > { %v1629_v40 = vmax.f32 %v812_v7, %v813_v23  ;;  %v799_v44 = vsel %vm442_vm4, %v757_v26, -inf  ;;  %v762_v46 = vsel %vm1614_vm14, %v1541_v38, -1e+30  ;;  %v1655_v57 = vmax.f32 %v884_v8, %v885_v24 }
  0x92   : > { %v1379_v41 = vpop.permute.xlu0 %1378  ;;  %v818_v0 = vsel %vm442_vm4, %v762_v46, -inf  ;;  %vm950_vm14 = vcmask 1041409  }
  0x93   : > { %v1381_v19 = vunpack.i.h.bf16 %v1379_v41  ;;  %v1380_v20 = vunpack.i.l.bf16 %v1379_v41  ;;  %v790_v41 = vsel %vm442_vm4, %v755_v27, -inf }
  0x95   : > { %vm1621_vm15 = vcmp.gt.f32.partialorder %v1381_v19, 0.5  ;;  %vm1625_vm0 = vcmp.gt.f32.partialorder %v1380_v20, 0.5 }
  0x96   : > { %v763_v51 = vsel %vm1625_vm0, %v1543_v39, -1e+30 }
  0x97   : > { %v826_v62 = vsel %vm442_vm4, %v763_v51, -inf }
  0x9a   : > { %v1357_v45 = vpop.permute.xlu1 %1356 }
  0x9b   : > { %v1358_v50 = vunpack.i.l.bf16 %v1357_v45  ;;  %v1359_v55 = vunpack.i.h.bf16 %v1357_v45  ;;  %v1397_v6 = vpop.permute.xlu2 %1396  ;;  %v778_v45 = vsel %vm1610_vm13, %v1541_v38, -1e+30 }
  0x9c   : > { %v1399_v36 = vunpack.i.h.bf16 %v1397_v6  ;;  %v1398_v37 = vunpack.i.l.bf16 %v1397_v6  ;;  %v890_v63 = vsel %vm442_vm4, %v778_v45, -inf }
  0x9d   : > { %vm1553_vm5 = vcmp.gt.f32.partialorder %v1358_v50, 0.5  ;;  %vm1561_vm7 = vcmp.gt.f32.partialorder %v1359_v55, 0.5  ;;  %v779_v50 = vsel %vm1621_vm15, %v1543_v39, -1e+30 }
  0x9e   : > { %v772_v2 = vsel %vm1553_vm5, %v1541_v38, -1e+30  ;;  %v774_v9 = vsel %vm1561_vm7, %v1541_v38, -1e+30  ;;  %vm1647_vm1 = vcmp.gt.f32.partialorder %v1399_v36, 0.5  ;;  %vm1651_vm2 = vcmp.gt.f32.partialorder %v1398_v37, 0.5 }
  0x9f   : > { %v863_v11 = vsel %vm442_vm4, %v772_v2, -inf  ;;  %v872_v18 = vsel %vm442_vm4, %v774_v9, -inf  ;;  %v898_v61 = vsel %vm442_vm4, %v779_v50, -inf  ;;  %v765_v4 = vsel %vm1651_vm2, %v1543_v39, -1e+30 }
  0xa0   : > { %v864_v25 = vmax.f32 %v862_v14, %v863_v11  ;;  %v873_v29 = vmax.f32 %v871_v22, %v872_v18  ;;  %v835_v21 = vsel %vm442_vm4, %v765_v4, -inf }
  0xa2   : > { %v1385_v58 = vpop.permute.xlu0 %1384  ;;  %v865_v42 = vrot.slane %v864_v25, 4  ;;  %v874_v49 = vrot.slane %v873_v29, 4 }
  0xa3   : > { %v1386_v3 = vunpack.i.l.bf16 %v1385_v58  ;;  %v1387_v5 = vunpack.i.h.bf16 %v1385_v58  ;;  %v1407_v48 = vpop.permute.xlu2 %1406 }
  0xa4   : > { %v866_v58 = vmax.f32 %v864_v25, %v865_v42  ;;  %v1409_v60 = vunpack.i.h.bf16 %v1407_v48  ;;  %v875_v1 = vmax.f32 %v873_v29, %v874_v49  ;;  %v1408_v9 = vunpack.i.l.bf16 %v1407_v48 }
  0xa5   : > { %vm1591_vm11 = vcmp.gt.f32.partialorder %v1386_v3, 0.5  ;;  %vm1596_vm12 = vcmp.gt.f32.partialorder %v1387_v5, 0.5  ;;  %v781_v3 = vsel %vm1647_vm1, %v1543_v39, -1e+30  ;;  %vm952_vm1 = vcmask 1042434  }
  0xa6   : > { %v756_v28 = vsel %vm1591_vm11, %v1541_v38, -1e+30  ;;  %v758_v32 = vsel %vm1596_vm12, %v1541_v38, -1e+30  ;;  %v867_v11 = vrot.slane %v866_v58, 2  ;;  %vm1675_vm6 = vcmp.gt.f32.partialorder %v1409_v60, 0.5 }
  0xa7   : > { %v791_v43 = vsel %vm442_vm4, %v756_v28, -inf  ;;  %v800_v47 = vsel %vm442_vm4, %v758_v32, -inf  ;;  %v907_v20 = vsel %vm442_vm4, %v781_v3, -inf  ;;  %v783_v24 = vsel %vm1675_vm6, %v1543_v39, -1e+30  ;;  %v1715_v32 = vld [vmem:[%s413_s19 + $0x8] sm:$0xff] }
  0xa8   : > { %v792_v53 = vmax.f32 %v790_v41, %v791_v43  ;;  %v801_v59 = vmax.f32 %v799_v44, %v800_v47  ;;  %vm1702_vm9 = vcmp.gt.f32.partialorder %v1408_v9, 0.5  ;;  %v876_v27 = vrot.slane %v875_v1, 2  ;;  %444 = vst.msk [vmem:[#allocation2 + $0x8] sm:$0xff] %vm442_vm4, %v1715_v32  ;;  %v1304_v60 = vld [vmem:[%s1839_s3 + $0x8] sm:$0xff] }
  0xa9   : > { %v916_v37 = vsel %vm442_vm4, %v783_v24, -inf  ;;  %v767_v41 = vsel %vm1702_vm9, %v1543_v39, -1e+30  ;;  %1044 = vmatpush.bf16.msra.mxu1 %v1304_v60  ;;  %v1305_v24 = vld [vmem:[%s1840_s4] sm:$0xff]  ;;  %vm956_vm6 = vcmask 1044484   ;;  %vm962_vm9 = vcmask 1047559  }
  0xaa   : > { %v1363_v33 = vpop.permute.xlu1 %1362  ;;  %v1412_v5 = vpop.permute.xlu0 %1411  ;;  %v793_v7 = vrot.slane %v792_v53, 4  ;;  %v802_v12 = vrot.slane %v801_v59, 4  ;;  %v877_v55 = vmax.f32 %v875_v1, %v876_v27  ;;  %v844_v56 = vsel %vm442_vm4, %v767_v41, -inf }
  0xab   : > { %v1365_v52 = vunpack.i.h.bf16 %v1363_v33  ;;  %v1364_v54 = vunpack.i.l.bf16 %v1363_v33  ;;  %v1414_v16 = vunpack.i.h.bf16 %v1412_v5  ;;  %v1413_v17 = vunpack.i.l.bf16 %v1412_v5 }
  0xac   : > { %v794_v23 = vmax.f32 %v792_v53, %v793_v7  ;;  %v803_v28 = vmax.f32 %v801_v59, %v802_v12  ;;  %v1717_v33 = vmax.f32 %v866_v58, %v867_v11 }
  0xad   : > { %vm1661_vm3 = vcmp.gt.f32.partialorder %v1365_v52, 0.5  ;;  %vm1671_vm5 = vcmp.gt.f32.partialorder %v1364_v54, 0.5  ;;  %vm1720_vm10 = vcmp.gt.f32.partialorder %v1414_v16, 0.5  ;;  %vm1724_vm11 = vcmp.gt.f32.partialorder %v1413_v17, 0.5 }
  0xae   : > { %v777_v15 = vsel %vm1661_vm3, %v1543_v39, -1e+30  ;;  %v761_v19 = vsel %vm1671_vm5, %v1543_v39, -1e+30  ;;  %v795_v45 = vrot.slane %v794_v23, 2  ;;  %v804_v49 = vrot.slane %v803_v28, 2 }
  0xaf   : > { %v889_v29 = vsel %vm442_vm4, %v777_v15, -inf  ;;  %v817_v34 = vsel %vm442_vm4, %v761_v19, -inf  ;;  %v784_v51 = vsel %vm1720_vm10, %v1541_v38, -1e+30  ;;  %v768_v52 = vsel %vm1724_vm11, %v1541_v38, -1e+30 }
  0xb0   : > { %v891_v46 = vmax.f32 %v889_v29, %v890_v63  ;;  %v819_v50 = vmax.f32 %v817_v34, %v818_v0  ;;  %v917_v0 = vsel %vm442_vm4, %v784_v51, -inf  ;;  %v845_v1 = vsel %vm442_vm4, %v768_v52, -inf  ;;  %v1306_v15 = vld [vmem:[%s1840_s4 + $0x8] sm:$0xff] }
  0xb1   : > { %v796_v7 = vmax.f32 %v794_v23, %v795_v45  ;;  %v805_v8 = vmax.f32 %v803_v28, %v804_v49  ;;  %v815_v16 = vrot.slane %v1629_v40, 1  ;;  %v918_v17 = vmax.f32 %v916_v37, %v917_v0  ;;  %1015 = vmatpush.bf16.msra.mxu0 %v1306_v15 }
  0xb2   : > { %v892_v63 = vrot.slane %v891_v46, 4  ;;  %v820_v3 = vrot.slane %v819_v50, 4  ;;  %v846_v18 = vmax.f32 %v844_v56, %v845_v1  ;;  %v984_v19 = vpack.c.bf16 %v1715_v32, %v1713_v31 }
  0xb3   : > { %v797_v25 = vrot.slane %v796_v7, 1  ;;  %v1776_v36 = vmax.f32 %v1629_v40, %v815_v16  ;;  %v887_v37 = vrot.slane %v1655_v57, 1  ;;  %v919_v41 = vrot.slane %v918_v17, 4 }
  0xb4   : > { %v821_v22 = vmax.f32 %v819_v50, %v820_v3  ;;  %v893_v23 = vmax.f32 %v891_v46, %v892_v63  ;;  %vm954_vm5 = vcmask 1043459  }
  0xb5   : > { %1016 = vmatpush.bf16.msra.mxu0 %v1305_v24  ;;  %v798_v50 = vmax.f32 %v796_v7, %v797_v25 }
  0xb6   : > { %v822_v45 = vrot.slane %v821_v22, 2  ;;  %v894_v46 = vrot.slane %v893_v23, 2 }
  0xb8   : > { %v895_v60 = vmax.f32 %v893_v23, %v894_v46 }
  0xba   : > { %v1391_v6 = vpop.permute.xlu1 %1390 }
  0xbb   : > { %v1393_v10 = vunpack.i.h.bf16 %v1391_v6  ;;  %v1392_v14 = vunpack.i.l.bf16 %v1391_v6  ;;  %v1303_v6 = vld [vmem:[%s1839_s3] sm:$0xff] }
  0xbc   : > { %1045 = vmatpush.bf16.msra.mxu1 %v1303_v6 }
  0xbd   : > { %vm1682_vm7 = vcmp.gt.f32.partialorder %v1393_v10, 0.5  ;;  %vm1695_vm8 = vcmp.gt.f32.partialorder %v1392_v14, 0.5 }
  0xbe   : > { %v780_v26 = vsel %vm1682_vm7, %v1541_v38, -1e+30  ;;  %v764_v30 = vsel %vm1695_vm8, %v1541_v38, -1e+30  ;;  %vm958_vm7 = vcmask 1045509   ;;  %vm960_vm8 = vcmask 1046534  }
  0xbf   : > { %v899_v42 = vsel %vm442_vm4, %v780_v26, -inf  ;;  %v827_v43 = vsel %vm442_vm4, %v764_v30, -inf  ;;  %v806_v26 = vrot.slane %v805_v8, 1  ;;  %1294 = vmatmul.msk.bf16.vlgmr.msra.gmra.mxu1 %vm442_vm4, %v984_v19 }
  0xc0   : > { %v828_v53 = vmax.f32 %v826_v62, %v827_v43  ;;  %v900_v54 = vmax.f32 %v898_v61, %v899_v42  ;;  %v1424_v62 = vpop.permute.xlu2 %1423  ;;  %v847_v42 = vrot.slane %v846_v18, 4 }
  0xc1   : > { %v1426_v13 = vunpack.i.h.bf16 %v1424_v62  ;;  %v1425_v14 = vunpack.i.l.bf16 %v1424_v62  ;;  %v807_v51 = vmax.f32 %v805_v8, %v806_v26 }
  0xc2   : > { %v1402_v44 = vpop.permute.xlu1 %1401  ;;  %v829_v9 = vrot.slane %v828_v53, 4  ;;  %v901_v10 = vrot.slane %v900_v54, 4 }
  0xc3   : > { %v1404_v47 = vunpack.i.h.bf16 %v1402_v44  ;;  %v1403_v48 = vunpack.i.l.bf16 %v1402_v44  ;;  %vm1767_vm15 = vcmp.gt.f32.partialorder %v1426_v13, 0.5  ;;  %vm1771_vm0 = vcmp.gt.f32.partialorder %v1425_v14, 0.5 }
  0xc4   : > { %v830_v27 = vmax.f32 %v828_v53, %v829_v9  ;;  %v902_v28 = vmax.f32 %v900_v54, %v901_v10  ;;  %v786_v49 = vsel %vm1767_vm15, %v1541_v38, -1e+30  ;;  %v770_v40 = vsel %vm1771_vm0, %v1541_v38, -1e+30 }
  0xc5   : > { %vm686_vm12 = vcmp.gt.f32.partialorder %v1404_v47, 0.5  ;;  %vm670_vm13 = vcmp.gt.f32.partialorder %v1403_v48, 0.5  ;;  %v920_v54 = vmax.f32 %v918_v17, %v919_v41  ;;  %v926_v63 = vsel %vm442_vm4, %v786_v49, -inf }
  0xc6   : > { %v782_v58 = vsel %vm686_vm12, %v1541_v38, -1e+30  ;;  %v766_v59 = vsel %vm670_vm13, %v1541_v38, -1e+30  ;;  %v831_v47 = vrot.slane %v830_v27, 2  ;;  %v903_v48 = vrot.slane %v902_v28, 2 }
  0xc7   : > { %v908_v2 = vsel %vm442_vm4, %v782_v58, -inf  ;;  %v836_v61 = vsel %vm442_vm4, %v766_v59, -inf  ;;  %v823_v59 = vmax.f32 %v821_v22, %v822_v45  ;;  %v854_v0 = vsel %vm442_vm4, %v770_v40, -inf }
  0xc8   : > { %v837_v4 = vmax.f32 %v835_v21, %v836_v61  ;;  %v909_v5 = vmax.f32 %v907_v20, %v908_v2  ;;  %v869_v20 = vrot.slane %v1717_v33, 1  ;;  %v878_v21 = vrot.slane %v877_v55, 1 }
  0xc9   : > { %v832_v2 = vmax.f32 %v830_v27, %v831_v47  ;;  %v904_v61 = vmax.f32 %v902_v28, %v903_v48  ;;  %v824_v8 = vrot.slane %v823_v59, 1  ;;  %v896_v9 = vrot.slane %v895_v60, 1 }
  0xca   : > { %v838_v11 = vrot.slane %v837_v4, 4  ;;  %v910_v12 = vrot.slane %v909_v5, 4  ;;  %v870_v43 = vmax.f32 %v1717_v33, %v869_v20  ;;  %v879_v44 = vmax.f32 %v877_v55, %v878_v21 }
  0xcb   : > { %v848_v55 = vmax.f32 %v846_v18, %v847_v42  ;;  %v833_v14 = vrot.slane %v832_v2, 1  ;;  %v905_v15 = vrot.slane %v904_v61, 1  ;;  %v951_v19 = vsel %vm950_vm14, %v807_v51, %v798_v50 }
  0xcc   : > { %v839_v29 = vmax.f32 %v837_v4, %v838_v11  ;;  %v911_v30 = vmax.f32 %v909_v5, %v910_v12  ;;  %v921_v4 = vrot.slane %v920_v54, 2  ;;  %v888_v12 = vmax.f32 %v1655_v57, %v887_v37 }
  0xcd   : > { %v849_v5 = vrot.slane %v848_v55, 2  ;;  %v964_v13 = vsel %vm950_vm14, %v879_v44, %v870_v43  ;;  %v825_v22 = vmax.f32 %v823_v59, %v824_v8  ;;  %v897_v23 = vmax.f32 %v895_v60, %v896_v9 }
  0xce   : > { %v840_v52 = vrot.slane %v839_v29, 2  ;;  %v912_v53 = vrot.slane %v911_v30, 2  ;;  %v922_v20 = vmax.f32 %v920_v54, %v921_v4  ;;  %v965_v26 = vsel %vm952_vm1, %v888_v12, %v964_v13  ;;  %v788_v54 = vld [vmem:[#allocation2 + $0x8] sm:$0xff] }
  0xcf   : > { %v850_v21 = vmax.f32 %v848_v55, %v849_v5  ;;  %v834_v57 = vmax.f32 %v832_v2, %v833_v14  ;;  %v906_v27 = vmax.f32 %v904_v61, %v905_v15  ;;  %v953_v35 = vsel %vm952_vm1, %v1776_v36, %v951_v19 }
  0xd0   : > { %v841_v38 = vmax.f32 %v839_v29, %v840_v52  ;;  %v913_v62 = vmax.f32 %v911_v30, %v912_v53  ;;  %v923_v37 = vrot.slane %v922_v20, 1  ;;  %v955_v42 = vsel %vm954_vm5, %v825_v22, %v953_v35 }
  0xd1   : > { %v851_v41 = vrot.slane %v850_v21, 1  ;;  %v966_v43 = vsel %vm954_vm5, %v897_v23, %v965_v26  ;;  %v957_v46 = vsel %vm956_vm6, %v834_v57, %v955_v42 }
  0xd2   : > { %v1418_v33 = vpop.permute.xlu1 %1417  ;;  %v842_v16 = vrot.slane %v841_v38, 1  ;;  %v914_v17 = vrot.slane %v913_v62, 1  ;;  %v967_v47 = vsel %vm956_vm6, %v906_v27, %v966_v43  ;;  %v924_v51 = vmax.f32 %v922_v20, %v923_v37 }
  0xd3   : > { %v1420_v56 = vunpack.i.h.bf16 %v1418_v33  ;;  %v1419_v58 = vunpack.i.l.bf16 %v1418_v33  ;;  %v852_v36 = vmax.f32 %v850_v21, %v851_v41  ;;  %v787_v33 = vld [vmem:[#allocation2] sm:$0xff] }
  0xd4   : > { %v843_v28 = vmax.f32 %v841_v38, %v842_v16  ;;  %v915_v29 = vmax.f32 %v913_v62, %v914_v17 }
  0xd5   : > { %vm689_vm2 = vcmp.gt.f32.partialorder %v1420_v56, 0.5  ;;  %vm673_vm3 = vcmp.gt.f32.partialorder %v1419_v58, 0.5 }
  0xd6   : > { %v785_v3 = vsel %vm689_vm2, %v1543_v39, -1e+30  ;;  %v769_v1 = vsel %vm673_vm3, %v1543_v39, -1e+30  ;;  %v959_v48 = vsel %vm958_vm7, %v843_v28, %v957_v46  ;;  %v968_v49 = vsel %vm958_vm7, %v915_v29, %v967_v47  ;;  %v1428_v47 = vld [vmem:[%s1842_s6] ss:$0 sm:$0xff] }
  0xd7   : > { %v925_v6 = vsel %vm442_vm4, %v785_v3, -inf  ;;  %v853_v7 = vsel %vm442_vm4, %v769_v1, -inf  ;;  %v961_v55 = vsel %vm960_vm8, %v852_v36, %v959_v48  ;;  %v969_v56 = vsel %vm960_vm8, %v924_v51, %v968_v49  ;;  %v1427_v1 = vld [vmem:[%s1841_s5] ss:$0 sm:$0xff] }
  0xd8   : > { %v927_v10 = vmax.f32 %v925_v6, %v926_v63  ;;  %v855_v11 = vmax.f32 %v853_v7, %v854_v0 }
  0xda   : > { %v928_v18 = vrot.slane %v927_v10, 4  ;;  %v856_v39 = vrot.slane %v855_v11, 4 }
  0xdc   : > { %v929_v24 = vmax.f32 %v927_v10, %v928_v18  ;;  %v857_v25 = vmax.f32 %v855_v11, %v856_v39  ;;  %v1464_v11 = vmov 32.0  }
  0xdd   : > { %1430 = vrcp.f32 %v1464_v11 }
  0xde   : > { %v930_v30 = vrot.slane %v929_v24, 2  ;;  %v858_v34 = vrot.slane %v857_v25, 2 }
  0xe0   : > { %v931_v44 = vmax.f32 %v929_v24, %v930_v30  ;;  %v859_v45 = vmax.f32 %v857_v25, %v858_v34 }
  0xe2   : > { %v932_v40 = vrot.slane %v931_v44, 1  ;;  %v860_v50 = vrot.slane %v859_v45, 1 }
  0xe3   : > { %v1431_v12 = vpop.eup %1430 }
  0xe4   : > { %v933_v52 = vmax.f32 %v931_v44, %v932_v40  ;;  %v861_v53 = vmax.f32 %v859_v45, %v860_v50  ;;  %v1065_v13 = vmul.f32 32.0, %v1431_v12  ;;  %vm1069_vm10 = vweird.f32 %v1431_v12  ;;  %v1429_v40 = vld [vmem:[%s1843_s7] ss:$0 sm:$0xff] }
  0xe6   : > { %v963_v58 = vsel %vm962_vm9, %v861_v53, %v961_v55  ;;  %v970_v59 = vsel %vm962_vm9, %v933_v52, %v969_v56  ;;  %v1066_v14 = vsub.f32 1.0, %v1065_v13 }
  0xe7   : > { %v973_v60 = vmax.f32 %v787_v33, %v963_v58  ;;  %v974_v63 = vmax.f32 %v788_v54, %v970_v59 }
  0xe8   : > { %v1067_v15 = vmul.f32 %v1431_v12, %v1066_v14 }
  0xe9   : > { %975 = vst.msk [vmem:[#allocation2] sm:$0xff] %vm442_vm4, %v973_v60 }
  0xea   : > { %976 = vst.msk [vmem:[#allocation2 + $0x8] sm:$0xff] %vm442_vm4, %v974_v63  ;;  %v1068_v16 = vadd.f32 %v1431_v12, %v1067_v15 }
  0xec   : > { %v1070_v17 = vsel %vm1069_vm10, %v1431_v12, %v1068_v16 }
  0xf0   : > { %v980_v0 = vld [vmem:[#allocation2] sm:$0xff] }
  0xf1   : > { %v981_v2 = vld [vmem:[#allocation2 + $0x8] sm:$0xff]  ;;  %v982_v61 = vsub.f32 %v980_v0, %v1713_v31 }
  0xf2   : > { %v983_v38 = vsub.f32 %v981_v2, %v1715_v32 }
  0xf4   : > { %v989_v62 = vpack.c.bf16 %v983_v38, %v982_v61 }
  0xf6   : > { %1285 = vmatmul.msk.bf16.vlgmr.msra.gmra.mxu0 %vm442_vm4, %v989_v62 }
 0x13c   : > { %v1047_v3 = vpop.f32.mrf.mxu1 }
 0x144   : > { %v1049_v8 = vpop.f32.mrf.mxu1 }
 0x173   : > { %v1018_v4 = vpop.f32.mrf.mxu0 }
 0x174   : > { %v1048_v5 = vadd.f32 %v1047_v3, %v1018_v4 }
 0x176   : > { %v1056_v6 = vadd.f32 %v1427_v1, %v1048_v5 }
 0x178   : > { %v1058_v7 = vsel %vm442_vm4, %v1056_v6, 0.0 }
 0x179   : > { %1059 = vadd.xlane.f32.xlu1 %v1058_v7 }
 0x17b   : > { %v1020_v9 = vpop.f32.mrf.mxu0 }
 0x17c   : > { %v1050_v10 = vadd.f32 %v1049_v8, %v1020_v9 }
 0x17e   : > { %v1057_v31 = vadd.f32 %v1427_v1, %v1050_v10 }
 0x180   : > { %v1061_v32 = vsel %vm442_vm4, %v1057_v31, 0.0 }
 0x181   : > { %1062 = vadd.xlane.f32.xlu2 %v1061_v32 }
 0x1ec   : > { %v1060_v18 = vpop.xlane.xlu1 %1059 }
 0x1ed   : > { %v1071_v39 = vmul.f32 %v1070_v17, %v1060_v18 }
 0x1ef   : > { %v1073_v19 = vsub.f32 %v1056_v6, %v1071_v39 }
 0x1f1   : > { %v1075_v20 = vmul.f32 %v1073_v19, %v1073_v19 }
 0x1f3   : > { %v1077_v21 = vsel %vm442_vm4, %v1075_v20, 0.0 }
 0x1f4   : > { %1078 = vadd.xlane.f32.xlu0 %v1077_v21  ;;  %v1063_v22 = vpop.xlane.xlu2 %1062 }
 0x1f5   : > { %v1072_v23 = vmul.f32 %v1070_v17, %v1063_v22 }
 0x1f7   : > { %v1074_v24 = vsub.f32 %v1057_v31, %v1072_v23 }
 0x1f9   : > { %v1076_v25 = vmul.f32 %v1074_v24, %v1074_v24 }
 0x1fb   : > { %v1080_v26 = vsel %vm442_vm4, %v1076_v25, 0.0 }
 0x1fc   : > { %1081 = vadd.xlane.f32.xlu2 %v1080_v26 }
 0x267   : > { %v1079_v57 = vpop.xlane.xlu0 %1078 }
 0x268   : > { %v1083_v27 = vmul.f32 %v1079_v57, %v1070_v17 }
 0x26a   : > { %v1085_v28 = vadd.f32 1e-05, %v1083_v27 }
 0x26c   : > { %1432 = vrsqrt.f32 %v1085_v28  ;;  %vm1093_vm12 = vweird.f32 %v1085_v28 }
 0x26f   : > { %v1082_v29 = vpop.xlane.xlu2 %1081 }
 0x270   : > { %v1084_v30 = vmul.f32 %v1082_v29, %v1070_v17 }
 0x272   : > { %v1433_v34 = vpop.eup %1432  ;;  %v1086_v35 = vadd.f32 1e-05, %v1084_v30 }
 0x273   : > { %v1088_v37 = vmul.f32 %v1433_v34, %v1085_v28  ;;  %vm1094_vm11 = vweird.f32 %v1433_v34 }
 0x274   : > { %1434 = vrsqrt.f32 %v1086_v35  ;;  %vm1095_vm13 = vmor %vm1093_vm12, %vm1094_vm11  ;;  %vm1103_vm15 = vweird.f32 %v1086_v35 }
 0x275   : > { %v1089_v41 = vmul.f32 %v1433_v34, %v1088_v37 }
 0x277   : > { %v1090_v42 = vmul.f32 0.5, %v1089_v41 }
 0x279   : > { %v1091_v43 = vsub.f32 1.5, %v1090_v42 }
 0x27a   : > { %v1435_v44 = vpop.eup %1434 }
 0x27b   : > { %v1092_v45 = vmul.f32 %v1433_v34, %v1091_v43  ;;  %v1098_v46 = vmul.f32 %v1435_v44, %v1086_v35  ;;  %vm1104_vm14 = vweird.f32 %v1435_v44 }
 0x27c   : > { %vm1105_vm0 = vmor %vm1103_vm15, %vm1104_vm14 }
 0x27d   : > { %v1096_v48 = vsel %vm1095_vm13, %v1433_v34, %v1092_v45  ;;  %v1099_v49 = vmul.f32 %v1435_v44, %v1098_v46 }
 0x27e   : > { %v1107_v50 = vmul.f32 %v1096_v48, %v1073_v19 }
 0x27f   : > { %v1100_v51 = vmul.f32 0.5, %v1099_v49 }
 0x280   : > { %v1113_v36 = vmul.f32 %v1428_v47, %v1107_v50 }
 0x281   : > { %v1101_v52 = vsub.f32 1.5, %v1100_v51 }
 0x282   : > { %v1119_v53 = vadd.f32 %v1429_v40, %v1113_v36 }
 0x283   : > { %v1102_v33 = vmul.f32 %v1435_v44, %v1101_v52 }
 0x284   : > { %v1123_v54 = vmin.f32 %v1119_v53, 0.0  ;;  %vm1121_vm1 = vcmp.gt.f32.partialorder %v1119_v53, 0.0 }
 0x285   : > { %v1106_v55 = vsel %vm1105_vm0, %v1435_v44, %v1102_v33 }
 0x286   : > { %v1125_v56 = vmul.f32 1.442695, %v1123_v54  ;;  %v1108_v58 = vmul.f32 %v1106_v55, %v1074_v24 }
 0x288   : > { %1436 = vpow2.f32 %v1125_v56  ;;  %v1114_v59 = vmul.f32 %v1428_v47, %v1108_v58 }
 0x28a   : > { %v1120_v60 = vadd.f32 %v1429_v40, %v1114_v59 }
 0x28c   : > { %v1124_v63 = vmin.f32 %v1120_v60, 0.0  ;;  %vm1122_vm2 = vcmp.gt.f32.partialorder %v1120_v60, 0.0 }
 0x28e   : > { %v1437_v0 = vpop.eup %1436  ;;  %v1127_v2 = vmul.f32 1.442695, %v1124_v63 }
 0x28f   : > { %v1295_v61 = vadd.f32 -1.0, %v1437_v0 }
 0x290   : > { %1438 = vpow2.f32 %v1127_v2 }
 0x291   : > { %v1131_v38 = vsel %vm1121_vm1, %v1119_v53, %v1295_v61 }
 0x292   : > { %1133 = vst.msk [vmem:[%s433_s18] sm:$0xff] %vm442_vm4, %v1131_v38 }
 0x296   : > { %v1439_v62 = vpop.eup %1438 }
 0x297   : > { %v1296_v3 = vadd.f32 -1.0, %v1439_v62 }
 0x299   : > { %v1132_v1 = vsel %vm1122_vm2, %v1120_v60, %v1296_v3 }
 0x29a   : > { %1134 = vst.msk [vmem:[%s433_s18 + $0x8] sm:$0xff] %vm442_vm4, %v1132_v1 }
 0x29b PF: > { %s18_s29 = sadd.s32 1, %s1462_s29   ;;  %s1893_s27 = smov %s1458_s28 }
 0x29c   : > { %p15_p5 = scmp.ge.s32.totalorder %s18_s29, 4   ;;  %s1894_s28 = smov %s1896_s30 }
 0x29e   :  { %17 = sbr.rel (!%p15_p5) target bundleno = 2 (0x2), region = 96 }

// kernel: simple_mrconv_forward.3
= control target key start
LH: loop header
LB: loop body
LE: loop exit
PB: predicated region body
PF: predicated region fallthrough
CT: control target
= control target key end

     0   :  { %s1468_s27 = smov 0   ;;  %s1470_s28 = smov 0   ;;  %s1796_s0 = inlined_call_operand.vmem [shape: bf16[2,16,16], index: 0, kind: input, shape index: {}]   ;;  %s1797_s1 = inlined_call_operand.vmem [shape: f32[2,16,8], index: 1, kind: input, shape index: {}, may-alias: {1,2}]   ;;  %s1798_s2 = inlined_call_operand.vmem [shape: f32[2,16,8], index: 2, kind: input, shape index: {}, may-alias: {1,2}]   ;;  %s1799_s3 = inlined_call_operand.vmem [shape: bf16[8,32], index: 3, kind: input, shape index: {}]   ;;  %s1800_s4 = inlined_call_operand.vmem [shape: bf16[8,32], index: 4, kind: input, shape index: {}]   ;;  %s1801_s5 = inlined_call_operand.vmem [shape: f32[1,32], index: 5, kind: input, shape index: {}]   ;;  %s1802_s6 = inlined_call_operand.vmem [shape: f32[1,32], index: 6, kind: input, shape index: {}]   ;;  %s1803_s7 = inlined_call_operand.vmem [shape: f32[1,32], index: 7, kind: input, shape index: {}]   ;;  %s1804_s8 = inlined_call_operand.vmem [shape: f32[2,16,32], index: 8, kind: output, shape index: {}]  }
   0x1   :  { %s1472_s29 = smov 0  }
   0x2 LB: > { %s37_s30 = sadd.s32 1, %s1416_s28  ;;  %p1246_p0 = scmp.ge.s32.totalorder %s1420_s29, 1  ;;  %s1420_s29 = sphi %s1472_s29, %s18_s29   ;;  %s1416_s28 = sphi %s1470_s28, %s1854_s28   ;;  %s1412_s27 = sphi %s1468_s27, %s1853_s27  }
   0x3   : > { %p39_p1 = scmp.ge.s32.totalorder %s37_s30, 2  ;;  %p329_p2 = scmp.lt.s32.totalorder %s1420_s29, 3 }
   0x5   : > { %s1856_s30 = smov (%p39_p1, %s37_s30), 0  ;;  %p330_p3 = pnand %p1246_p0, %p329_p2 }
   0x6   : > { %p393_p4 = scmp.lt.s32.totalorder (!%p330_p3), %s1412_s27, 1 }
   0x7   : > { %333 = sbr.rel (%p330_p3) target bundleno = 667 (0x29b), region = 52 }
   0xc   : > { %v452_v0 = vlaneseq  ;;  %s1858_s27 = smov (!%p393_p4, %s1412_s27), 1  ;;  %vm442_vm4 = vcmask 64512  }
   0xd   : > { %s1261_s9 = sshll.u32 %s1858_s27, 3  ;;  %s1493_s13 = sshll.u32 %s1858_s27, 4 }
   0xe   : > { %v453_v1 = vshrl.u32 %v452_v0, 7  ;;  %s403_s12 = scalar_lea.vmem %s1796_s0, %s1261_s9  ;;  %s423_s16 = scalar_lea.vmem %s1798_s2, %s1493_s13 }
   0xf   : > { %v1266_v2 = vld [vmem:[%s403_s12] sm:$0xff]   ;;  %v1499_v38 = vld [vmem:[%s423_s16 + $0x8] sm:$0xff]  ;;  %s413_s19 = scalar_lea.vmem %s1797_s1, %s1493_s13  ;;  %s433_s14 = scalar_lea.vmem %s1804_s8, %s1493_s13 }
  0x10   : > { %1300 = vset.pattern.permute.xlu1 %v453_v1  ;;  %1294 = vset.pattern.permute.xlu0 %v453_v1  ;;  %v1268_v3 = vunpack.c.h.bf16 %v1266_v2  ;;  %v1267_v4 = vunpack.c.l.bf16 %v1266_v2  ;;  %v460_v16 = vadd.s32 8, %v453_v1  ;;  %v1501_v39 = vld [vmem:[%s423_s16] sm:$0xff] }
  0x11   : > { %1306 = vset.pattern.permute.xlu2 %v453_v1 }
  0x12   : > { %v555_v5 = vperm.slane %v1268_v3, 0  ;;  %v568_v6 = vperm.slane %v1268_v3, 1  ;;  %v451_v7 = vperm.slane %v1267_v4, 0  ;;  %v464_v8 = vperm.slane %v1267_v4, 1 }
  0x13   : > { %v477_v9 = vperm.slane %v1267_v4, 2  ;;  %v581_v10 = vperm.slane %v1268_v3, 2  ;;  %v503_v14 = vperm.slane %v1267_v4, 4  ;;  %v607_v15 = vperm.slane %v1268_v3, 4 }
  0x14   : > { %v1301_v11 = vpack.i.bf16 %v568_v6, %v555_v5  ;;  %v1295_v12 = vpack.i.bf16 %v464_v8, %v451_v7  ;;  %v490_v18 = vperm.slane %v1267_v4, 3  ;;  %v594_v19 = vperm.slane %v1268_v3, 3 }
  0x15   : > { %v1307_v13 = vpack.i.bf16 %v581_v10, %v477_v9  ;;  %v1335_v17 = vpack.i.bf16 %v607_v15, %v503_v14  ;;  %v529_v21 = vperm.slane %v1267_v4, 6  ;;  %v633_v22 = vperm.slane %v1268_v3, 6 }
  0x16   : > { %v1330_v20 = vpack.i.bf16 %v594_v19, %v490_v18  ;;  %v542_v24 = vperm.slane %v1267_v4, 7  ;;  %v646_v25 = vperm.slane %v1268_v3, 7  ;;  %v516_v27 = vperm.slane %v1267_v4, 5 }
  0x17   : > { %v1368_v23 = vpack.i.bf16 %v633_v22, %v529_v21  ;;  %v620_v28 = vperm.slane %v1268_v3, 5 }
  0x18   : > { %1302 = vperm.xlu1 %1300, %v1301_v11   ;;  %1296 = vperm.xlu0 %1294, %v1295_v12   ;;  %v1374_v26 = vpack.i.bf16 %v646_v25, %v542_v24 }
  0x19   : > { %1308 = vperm.xlu2 %1306, %v1307_v13   ;;  %v1353_v29 = vpack.i.bf16 %v620_v28, %v516_v27 }
  0x20   : > { %1312 = vset.pattern.permute.xlu1 %v460_v16  ;;  %1336 = vperm.xlu0 %1294, %v1335_v17  }
  0x21   : > { %1324 = vset.pattern.permute.xlu2 %v460_v16 }
  0x28   : > { %1314 = vperm.xlu1 %1312, %v1301_v11   ;;  %1340 = vset.pattern.permute.xlu0 %v460_v16 }
  0x29   : > { %1326 = vperm.xlu2 %1324, %v1307_v13  }
  0x30   : > { %1318 = vset.pattern.permute.xlu1 %v453_v1  ;;  %1342 = vperm.xlu0 %1340, %v1295_v12  }
  0x31   : > { %1331 = vperm.xlu2 %1324, %v1330_v20  }
  0x38   : > { %1320 = vperm.xlu1 %1318, %v1330_v20   ;;  %1369 = vperm.xlu0 %1340, %v1368_v23  }
  0x39   : > { %1352 = vset.pattern.permute.xlu2 %v453_v1 }
  0x40   : > { %1346 = vset.pattern.permute.xlu1 %v460_v16 }
  0x41   : > { %1354 = vperm.xlu2 %1352, %v1353_v29  }
  0x48   : > { %1348 = vperm.xlu1 %1346, %v1335_v17  }
  0x49   : > { %1364 = vperm.xlu2 %1352, %v1368_v23  }
  0x50   : > { %1359 = vperm.xlu1 %1346, %v1353_v29  }
  0x51   : > { %1379 = vset.pattern.permute.xlu2 %v460_v16 }
  0x58   : > { %1373 = vset.pattern.permute.xlu1 %v453_v1 }
  0x59   : > { %1381 = vperm.xlu2 %1379, %v1374_v26  }
  0x60   : > { %1375 = vperm.xlu1 %1373, %v1374_v26  }
  0x73   : > { %v1309_v30 = vpop.permute.xlu2 %1308 }
  0x74   : > { %v1311_v33 = vunpack.i.h.bf16 %v1309_v30  ;;  %v1310_v34 = vunpack.i.l.bf16 %v1309_v30 }
  0x76   : > { %vm679_vm0 = vcmp.gt.f32.partialorder %v1311_v33, 0.5  ;;  %vm663_vm1 = vcmp.gt.f32.partialorder %v1310_v34, 0.5  ;;  %v1677_v34 = vld [vmem:[%s413_s19] sm:$0xff] }
  0x77   : > { %v775_v41 = vsel %vm679_vm0, %v1501_v39, -1e+30  ;;  %v759_v42 = vsel %vm663_vm1, %v1501_v39, -1e+30  ;;  %443 = vst.msk [vmem:[#allocation2] sm:$0xff] %vm442_vm4, %v1677_v34 }
  0x78   : > { %v880_v46 = vsel %vm442_vm4, %v775_v41, -inf  ;;  %v808_v47 = vsel %vm442_vm4, %v759_v42, -inf }
  0x83   : > { %v1327_v32 = vpop.permute.xlu2 %1326 }
  0x84   : > { %v1329_v36 = vunpack.i.h.bf16 %v1327_v32  ;;  %v1328_v37 = vunpack.i.l.bf16 %v1327_v32 }
  0x86   : > { %vm680_vm2 = vcmp.gt.f32.partialorder %v1329_v36, 0.5  ;;  %vm664_vm3 = vcmp.gt.f32.partialorder %v1328_v37, 0.5 }
  0x87   : > { %v776_v43 = vsel %vm680_vm2, %v1499_v38, -1e+30  ;;  %v760_v44 = vsel %vm664_vm3, %v1499_v38, -1e+30 }
  0x88   : > { %v881_v48 = vsel %vm442_vm4, %v776_v43, -inf  ;;  %v809_v49 = vsel %vm442_vm4, %v760_v44, -inf }
  0x89   : > { %v810_v55 = vmax.f32 %v808_v47, %v809_v49  ;;  %v882_v56 = vmax.f32 %v880_v46, %v881_v48 }
  0x8a   : > { %v1297_v31 = vpop.permute.xlu0 %1296  ;;  %v1303_v35 = vpop.permute.xlu1 %1302 }
  0x8b   : > { %v1305_v52 = vunpack.i.h.bf16 %v1303_v35  ;;  %v1332_v53 = vpop.permute.xlu2 %1331  ;;  %v1304_v54 = vunpack.i.l.bf16 %v1303_v35  ;;  %v1298_v61 = vunpack.i.l.bf16 %v1297_v31  ;;  %v811_v63 = vrot.slane %v810_v55, 4 }
  0x8c   : > { %v883_v0 = vrot.slane %v882_v56, 4  ;;  %v1299_v1 = vunpack.i.h.bf16 %v1297_v31  ;;  %v1334_v8 = vunpack.i.h.bf16 %v1332_v53  ;;  %v1333_v17 = vunpack.i.l.bf16 %v1332_v53 }
  0x8d   : > { %vm1519_vm7 = vcmp.gt.f32.partialorder %v1305_v52, 0.5  ;;  %vm1523_vm8 = vcmp.gt.f32.partialorder %v1304_v54, 0.5  ;;  %vm1539_vm9 = vcmp.gt.f32.partialorder %v1298_v61, 0.5  ;;  %v812_v11 = vmax.f32 %v810_v55, %v811_v63 }
  0x8e   : > { %v773_v5 = vsel %vm1519_vm7, %v1501_v39, -1e+30  ;;  %v771_v6 = vsel %vm1523_vm8, %v1501_v39, -1e+30  ;;  %v884_v12 = vmax.f32 %v882_v56, %v883_v0  ;;  %vm1546_vm10 = vcmp.gt.f32.partialorder %v1299_v1, 0.5 }
  0x8f   : > { %v871_v15 = vsel %vm442_vm4, %v773_v5, -inf  ;;  %v862_v19 = vsel %vm442_vm4, %v771_v6, -inf  ;;  %v755_v20 = vsel %vm1539_vm9, %v1501_v39, -1e+30  ;;  %v813_v26 = vrot.slane %v812_v11, 2 }
  0x90   : > { %v885_v27 = vrot.slane %v884_v12, 2  ;;  %v757_v29 = vsel %vm1546_vm10, %v1501_v39, -1e+30  ;;  %v790_v30 = vsel %vm442_vm4, %v755_v20, -inf  ;;  %vm1569_vm13 = vcmp.gt.f32.partialorder %v1334_v8, 0.5 }
  0x91   : > { %vm1573_vm14 = vcmp.gt.f32.partialorder %v1333_v17, 0.5  ;;  %v1589_v44 = vmax.f32 %v812_v11, %v813_v26  ;;  %v799_v46 = vsel %vm442_vm4, %v757_v29, -inf  ;;  %v778_v47 = vsel %vm1569_vm13, %v1499_v38, -1e+30 }
  0x92   : > { %v1337_v40 = vpop.permute.xlu0 %1336  ;;  %v762_v48 = vsel %vm1573_vm14, %v1499_v38, -1e+30  ;;  %v890_v61 = vsel %vm442_vm4, %v778_v47, -inf  ;;  %vm991_vm14 = vcmask 1043456  }
  0x93   : > { %v1339_v21 = vunpack.i.h.bf16 %v1337_v40  ;;  %v1338_v22 = vunpack.i.l.bf16 %v1337_v40  ;;  %v815_v60 = vrot.slane %v1589_v44, 1  ;;  %v818_v1 = vsel %vm442_vm4, %v762_v48, -inf }
  0x95   : > { %vm1577_vm15 = vcmp.gt.f32.partialorder %v1339_v21, 0.5  ;;  %vm1581_vm0 = vcmp.gt.f32.partialorder %v1338_v22, 0.5 }
  0x96   : > { %v779_v52 = vsel %vm1577_vm15, %v1501_v39, -1e+30  ;;  %v763_v53 = vsel %vm1581_vm0, %v1501_v39, -1e+30  ;;  %vm950_vm15 = vcmask 1041409  }
  0x97   : > { %v898_v0 = vsel %vm442_vm4, %v779_v52, -inf }
  0x9a   : > { %v1315_v45 = vpop.permute.xlu1 %1314 }
  0x9b   : > { %v1317_v50 = vunpack.i.h.bf16 %v1315_v45  ;;  %v1316_v51 = vunpack.i.l.bf16 %v1315_v45  ;;  %v1355_v10 = vpop.permute.xlu2 %1354  ;;  %v1591_v45 = vmax.f32 %v884_v12, %v885_v27 }
  0x9c   : > { %v1357_v37 = vunpack.i.h.bf16 %v1355_v10  ;;  %v1356_v43 = vunpack.i.l.bf16 %v1355_v10 }
  0x9d   : > { %vm1511_vm5 = vcmp.gt.f32.partialorder %v1317_v50, 0.5  ;;  %vm1515_vm6 = vcmp.gt.f32.partialorder %v1316_v51, 0.5 }
  0x9e   : > { %v774_v2 = vsel %vm1511_vm5, %v1499_v38, -1e+30  ;;  %v772_v3 = vsel %vm1515_vm6, %v1499_v38, -1e+30  ;;  %vm1607_vm1 = vcmp.gt.f32.partialorder %v1357_v37, 0.5  ;;  %vm1611_vm2 = vcmp.gt.f32.partialorder %v1356_v43, 0.5 }
  0x9f   : > { %v872_v13 = vsel %vm442_vm4, %v774_v2, -inf  ;;  %v863_v14 = vsel %vm442_vm4, %v772_v3, -inf  ;;  %v781_v6 = vsel %vm1607_vm1, %v1501_v39, -1e+30  ;;  %v765_v7 = vsel %vm1611_vm2, %v1501_v39, -1e+30 }
  0xa0   : > { %v864_v23 = vmax.f32 %v862_v19, %v863_v14  ;;  %v873_v24 = vmax.f32 %v871_v15, %v872_v13  ;;  %v835_v27 = vsel %vm442_vm4, %v765_v7, -inf  ;;  %vm952_vm2 = vcmask 1042434  }
  0xa2   : > { %v1343_v59 = vpop.permute.xlu0 %1342  ;;  %v865_v40 = vrot.slane %v864_v23, 4  ;;  %v874_v41 = vrot.slane %v873_v24, 4 }
  0xa3   : > { %v1344_v4 = vunpack.i.l.bf16 %v1343_v59  ;;  %v1345_v9 = vunpack.i.h.bf16 %v1343_v59  ;;  %v1365_v51 = vpop.permute.xlu2 %1364 }
  0xa4   : > { %v866_v56 = vmax.f32 %v864_v23, %v865_v40  ;;  %v875_v57 = vmax.f32 %v873_v24, %v874_v41  ;;  %v1367_v63 = vunpack.i.h.bf16 %v1365_v51  ;;  %v1366_v3 = vunpack.i.l.bf16 %v1365_v51 }
  0xa5   : > { %vm1550_vm11 = vcmp.gt.f32.partialorder %v1344_v4, 0.5  ;;  %vm1558_vm12 = vcmp.gt.f32.partialorder %v1345_v9, 0.5  ;;  %v826_v4 = vsel %vm442_vm4, %v763_v53, -inf  ;;  %v907_v24 = vsel %vm442_vm4, %v781_v6, -inf }
  0xa6   : > { %v756_v28 = vsel %vm1550_vm11, %v1499_v38, -1e+30  ;;  %v758_v35 = vsel %vm1558_vm12, %v1499_v38, -1e+30  ;;  %v867_v10 = vrot.slane %v866_v56, 2  ;;  %v876_v11 = vrot.slane %v875_v57, 2 }
  0xa7   : > { %v791_v42 = vsel %vm442_vm4, %v756_v28, -inf  ;;  %v800_v49 = vsel %vm442_vm4, %v758_v35, -inf  ;;  %vm1637_vm6 = vcmp.gt.f32.partialorder %v1367_v63, 0.5  ;;  %vm1641_vm7 = vcmp.gt.f32.partialorder %v1366_v3, 0.5  ;;  %v1679_v35 = vld [vmem:[%s413_s19 + $0x8] sm:$0xff] }
  0xa8   : > { %v792_v54 = vmax.f32 %v790_v30, %v791_v42  ;;  %v801_v62 = vmax.f32 %v799_v46, %v800_v49  ;;  %v783_v28 = vsel %vm1637_vm6, %v1501_v39, -1e+30  ;;  %v1669_v30 = vmax.f32 %v866_v56, %v867_v10  ;;  %444 = vst.msk [vmem:[#allocation2 + $0x8] sm:$0xff] %vm442_vm4, %v1679_v35 }
  0xa9   : > { %v767_v32 = vsel %vm1641_vm7, %v1501_v39, -1e+30  ;;  %v916_v49 = vsel %vm442_vm4, %v783_v28, -inf  ;;  %v1736_v40 = vmax.f32 %v1589_v44, %v815_v60  ;;  %v887_v41 = vrot.slane %v1591_v45, 1 }
  0xaa   : > { %v1321_v36 = vpop.permute.xlu1 %1320  ;;  %v793_v5 = vrot.slane %v792_v54, 4  ;;  %v1370_v8 = vpop.permute.xlu0 %1369  ;;  %v802_v14 = vrot.slane %v801_v62, 4  ;;  %vm954_vm6 = vcmask 1043459   ;;  %vm956_vm7 = vcmask 1044484  }
  0xab   : > { %v1323_v50 = vunpack.i.h.bf16 %v1321_v36  ;;  %v1322_v58 = vunpack.i.l.bf16 %v1321_v36  ;;  %v1372_v19 = vunpack.i.h.bf16 %v1370_v8  ;;  %v1371_v20 = vunpack.i.l.bf16 %v1370_v8 }
  0xac   : > { %v794_v22 = vmax.f32 %v792_v54, %v793_v5  ;;  %v803_v31 = vmax.f32 %v801_v62, %v802_v14  ;;  %v1681_v36 = vmax.f32 %v875_v57, %v876_v11 }
  0xad   : > { %vm1619_vm3 = vcmp.gt.f32.partialorder %v1323_v50, 0.5  ;;  %vm1630_vm5 = vcmp.gt.f32.partialorder %v1322_v58, 0.5  ;;  %vm1684_vm10 = vcmp.gt.f32.partialorder %v1372_v19, 0.5  ;;  %vm1688_vm11 = vcmp.gt.f32.partialorder %v1371_v20, 0.5 }
  0xae   : > { %v777_v15 = vsel %vm1619_vm3, %v1501_v39, -1e+30  ;;  %v761_v23 = vsel %vm1630_vm5, %v1501_v39, -1e+30  ;;  %v795_v42 = vrot.slane %v794_v22, 2  ;;  %v844_v50 = vsel %vm442_vm4, %v767_v32, -inf }
  0xaf   : > { %v889_v26 = vsel %vm442_vm4, %v777_v15, -inf  ;;  %v817_v37 = vsel %vm442_vm4, %v761_v23, -inf  ;;  %v804_v53 = vrot.slane %v803_v31, 2  ;;  %v784_v55 = vsel %vm1684_vm10, %v1499_v38, -1e+30 }
  0xb0   : > { %v891_v43 = vmax.f32 %v889_v26, %v890_v61  ;;  %v819_v54 = vmax.f32 %v817_v37, %v818_v1  ;;  %v768_v56 = vsel %vm1688_vm11, %v1499_v38, -1e+30  ;;  %v796_v59 = vmax.f32 %v794_v22, %v795_v42 }
  0xb1   : > { %v917_v1 = vsel %vm442_vm4, %v784_v55, -inf  ;;  %v845_v6 = vsel %vm442_vm4, %v768_v56, -inf  ;;  %v984_v20 = vpack.c.bf16 %v1679_v35, %v1677_v34  ;;  %v869_v22 = vrot.slane %v1669_v30, 1 }
  0xb2   : > { %v892_v61 = vrot.slane %v891_v43, 4  ;;  %v918_v18 = vmax.f32 %v916_v49, %v917_v1  ;;  %v846_v19 = vmax.f32 %v844_v50, %v845_v6  ;;  %v878_v23 = vrot.slane %v1681_v36, 1 }
  0xb3   : > { %v1382_v5 = vpop.permute.xlu2 %1381  ;;  %v797_v26 = vrot.slane %v796_v59, 1  ;;  %vm962_vm10 = vcmask 1047559   ;;  %vm1035_vm11 = vcmask 261120  }
  0xb4   : > { %v1384_v15 = vunpack.i.h.bf16 %v1382_v5  ;;  %v1383_v16 = vunpack.i.l.bf16 %v1382_v5  ;;  %v893_v25 = vmax.f32 %v891_v43, %v892_v61  ;;  %v919_v42 = vrot.slane %v918_v18, 4 }
  0xb5   : > { %v847_v43 = vrot.slane %v846_v19, 4  ;;  %v798_v60 = vmax.f32 %v796_v59, %v797_v26 }
  0xb6   : > { %vm1725_vm0 = vcmp.gt.f32.partialorder %v1384_v15, 0.5  ;;  %vm1729_vm1 = vcmp.gt.f32.partialorder %v1383_v16, 0.5  ;;  %v894_v49 = vrot.slane %v893_v25, 2  ;;  %v920_v56 = vmax.f32 %v918_v18, %v919_v42 }
  0xb7   : > { %v770_v44 = vsel %vm1729_vm1, %v1499_v38, -1e+30 }
  0xb8   : > { %v854_v1 = vsel %vm442_vm4, %v770_v44, -inf }
  0xba   : > { %v1349_v9 = vpop.permute.xlu1 %1348 }
  0xbb   : > { %v1351_v13 = vunpack.i.h.bf16 %v1349_v9  ;;  %v1350_v17 = vunpack.i.l.bf16 %v1349_v9  ;;  %v805_v9 = vmax.f32 %v803_v31, %v804_v53 }
  0xbd   : > { %vm1645_vm8 = vcmp.gt.f32.partialorder %v1351_v13, 0.5  ;;  %vm1657_vm9 = vcmp.gt.f32.partialorder %v1350_v17, 0.5  ;;  %v987_v17 = vld [vmem:[%s1800_s4] sm:$0xf] }
  0xbe   : > { %v780_v29 = vsel %vm1645_vm8, %v1499_v38, -1e+30  ;;  %v764_v33 = vsel %vm1657_vm9, %v1499_v38, -1e+30  ;;  %v993_v21 = vsel %vm991_vm14, %v987_v17, 0  ;;  %vm958_vm8 = vcmask 1045509  }
  0xbf   : > { %v899_v46 = vsel %vm442_vm4, %v780_v29, -inf  ;;  %v827_v47 = vsel %vm442_vm4, %v764_v33, -inf  ;;  %1002 = vmatpush.bf16.msra.mxu0 %v993_v21  ;;  %vm960_vm9 = vcmask 1046534  }
  0xc0   : > { %v828_v57 = vmax.f32 %v826_v4, %v827_v47  ;;  %v900_v58 = vmax.f32 %v898_v0, %v899_v46  ;;  %v985_v4 = vld [vmem:[%s1799_s3] sm:$0xf]  ;;  %v820_v0 = vrot.slane %v819_v54, 4  ;;  %v870_v46 = vmax.f32 %v1669_v30, %v869_v22 }
  0xc1   : > { %v1013_v12 = vsel %vm991_vm14, %v985_v4, 0  ;;  %v879_v47 = vmax.f32 %v1681_v36, %v878_v23  ;;  %v848_v36 = vmax.f32 %v846_v19, %v847_v43 }
  0xc2   : > { %v1360_v48 = vpop.permute.xlu1 %1359  ;;  %v829_v10 = vrot.slane %v828_v57, 4  ;;  %v901_v11 = vrot.slane %v900_v58, 4  ;;  %1022 = vmatpush.bf16.msra.mxu1 %v1013_v12 }
  0xc3   : > { %v1362_v51 = vunpack.i.h.bf16 %v1360_v48  ;;  %v1361_v52 = vunpack.i.l.bf16 %v1360_v48  ;;  %v849_v6 = vrot.slane %v848_v36, 2 }
  0xc4   : > { %v830_v28 = vmax.f32 %v828_v57, %v829_v10  ;;  %v902_v29 = vmax.f32 %v900_v58, %v901_v11 }
  0xc5   : > { %vm686_vm12 = vcmp.gt.f32.partialorder %v1362_v51, 0.5  ;;  %vm670_vm13 = vcmp.gt.f32.partialorder %v1361_v52, 0.5  ;;  %1256 = vmatmul.msk.bf16.vlgmr.msra.gmra.mxu1 %vm442_vm4, %v984_v20  ;;  %v786_v52 = vsel %vm1725_vm0, %v1499_v38, -1e+30  ;;  %v850_v22 = vmax.f32 %v848_v36, %v849_v6 }
  0xc6   : > { %v782_v62 = vsel %vm686_vm12, %v1499_v38, -1e+30  ;;  %v766_v63 = vsel %vm670_vm13, %v1499_v38, -1e+30  ;;  %v831_v50 = vrot.slane %v830_v28, 2  ;;  %v903_v51 = vrot.slane %v902_v29, 2 }
  0xc7   : > { %v908_v2 = vsel %vm442_vm4, %v782_v62, -inf  ;;  %v836_v3 = vsel %vm442_vm4, %v766_v63, -inf  ;;  %v895_v62 = vmax.f32 %v893_v25, %v894_v49  ;;  %v926_v63 = vsel %vm442_vm4, %v786_v52, -inf }
  0xc8   : > { %v837_v7 = vmax.f32 %v835_v27, %v836_v3  ;;  %v909_v8 = vmax.f32 %v907_v24, %v908_v2  ;;  %v821_v24 = vmax.f32 %v819_v54, %v820_v0  ;;  %v806_v27 = vrot.slane %v805_v9, 1 }
  0xc9   : > { %v832_v2 = vmax.f32 %v830_v28, %v831_v50  ;;  %v904_v3 = vmax.f32 %v902_v29, %v903_v51  ;;  %v921_v0 = vrot.slane %v920_v56, 2  ;;  %v896_v10 = vrot.slane %v895_v62, 1 }
  0xca   : > { %v838_v13 = vrot.slane %v837_v7, 4  ;;  %v910_v14 = vrot.slane %v909_v8, 4  ;;  %v822_v48 = vrot.slane %v821_v24, 2  ;;  %v807_v53 = vmax.f32 %v805_v9, %v806_v27 }
  0xcb   : > { %v833_v15 = vrot.slane %v832_v2, 1  ;;  %v905_v16 = vrot.slane %v904_v3, 1  ;;  %v922_v21 = vmax.f32 %v920_v56, %v921_v0  ;;  %v851_v42 = vrot.slane %v850_v22, 1  ;;  %v788_v56 = vld [vmem:[#allocation2 + $0x8] sm:$0xff] }
  0xcc   : > { %v839_v31 = vmax.f32 %v837_v7, %v838_v13  ;;  %v911_v32 = vmax.f32 %v909_v8, %v910_v14  ;;  %v823_v61 = vmax.f32 %v821_v24, %v822_v48  ;;  %v888_v13 = vmax.f32 %v1591_v45, %v887_v41 }
  0xcd   : > { %v964_v14 = vsel %vm950_vm15, %v879_v47, %v870_v46  ;;  %v951_v20 = vsel %vm950_vm15, %v807_v53, %v798_v60  ;;  %v897_v24 = vmax.f32 %v895_v62, %v896_v10  ;;  %v834_v45 = vmax.f32 %v832_v2, %v833_v15 }
  0xce   : > { %v840_v54 = vrot.slane %v839_v31, 2  ;;  %v912_v55 = vrot.slane %v911_v32, 2  ;;  %v824_v9 = vrot.slane %v823_v61, 1  ;;  %v965_v27 = vsel %vm952_vm2, %v888_v13, %v964_v14 }
  0xcf   : > { %v906_v28 = vmax.f32 %v904_v3, %v905_v16  ;;  %v953_v37 = vsel %vm952_vm2, %v1736_v40, %v951_v20  ;;  %v923_v41 = vrot.slane %v922_v21, 1  ;;  %v966_v46 = vsel %vm954_vm6, %v897_v24, %v965_v27 }
  0xd0   : > { %v841_v38 = vmax.f32 %v839_v31, %v840_v54  ;;  %v913_v59 = vmax.f32 %v911_v32, %v912_v55  ;;  %v825_v23 = vmax.f32 %v823_v61, %v824_v9  ;;  %v852_v40 = vmax.f32 %v850_v22, %v851_v42 }
  0xd1   : > { %v967_v50 = vsel %vm956_vm7, %v906_v28, %v966_v46  ;;  %v924_v53 = vmax.f32 %v922_v21, %v923_v41 }
  0xd2   : > { %v1376_v30 = vpop.permute.xlu1 %1375  ;;  %v842_v17 = vrot.slane %v841_v38, 1  ;;  %v914_v18 = vrot.slane %v913_v59, 1  ;;  %v955_v43 = vsel %vm954_vm6, %v825_v23, %v953_v37 }
  0xd3   : > { %v1378_v57 = vunpack.i.h.bf16 %v1376_v30  ;;  %v1377_v58 = vunpack.i.l.bf16 %v1376_v30  ;;  %v957_v49 = vsel %vm956_vm7, %v834_v45, %v955_v43  ;;  %v787_v30 = vld [vmem:[#allocation2] sm:$0xff] }
  0xd4   : > { %v843_v29 = vmax.f32 %v841_v38, %v842_v17  ;;  %v915_v31 = vmax.f32 %v913_v59, %v914_v18 }
  0xd5   : > { %vm689_vm3 = vcmp.gt.f32.partialorder %v1378_v57, 0.5  ;;  %vm673_vm5 = vcmp.gt.f32.partialorder %v1377_v58, 0.5 }
  0xd6   : > { %v785_v5 = vsel %vm689_vm3, %v1501_v39, -1e+30  ;;  %v769_v4 = vsel %vm673_vm5, %v1501_v39, -1e+30  ;;  %v959_v51 = vsel %vm958_vm8, %v843_v29, %v957_v49  ;;  %v968_v52 = vsel %vm958_vm8, %v915_v31, %v967_v50  ;;  %v1386_v50 = vld [vmem:[%s1802_s6] ss:$0 sm:$0xff] }
  0xd7   : > { %v925_v7 = vsel %vm442_vm4, %v785_v5, -inf  ;;  %v853_v8 = vsel %vm442_vm4, %v769_v4, -inf  ;;  %v961_v36 = vsel %vm960_vm9, %v852_v40, %v959_v51  ;;  %v969_v57 = vsel %vm960_vm9, %v924_v53, %v968_v52  ;;  %v1385_v4 = vld [vmem:[%s1801_s5] ss:$0 sm:$0xff] }
  0xd8   : > { %v927_v11 = vmax.f32 %v925_v7, %v926_v63  ;;  %v855_v12 = vmax.f32 %v853_v8, %v854_v1 }
  0xda   : > { %v928_v19 = vrot.slane %v927_v11, 4  ;;  %v856_v39 = vrot.slane %v855_v12, 4 }
  0xdc   : > { %v929_v25 = vmax.f32 %v927_v11, %v928_v19  ;;  %v857_v26 = vmax.f32 %v855_v12, %v856_v39  ;;  %v1422_v12 = vmov 32.0  }
  0xdd   : > { %1388 = vrcp.f32 %v1422_v12 }
  0xde   : > { %v930_v32 = vrot.slane %v929_v25, 2  ;;  %v858_v33 = vrot.slane %v857_v26, 2 }
  0xe0   : > { %v931_v47 = vmax.f32 %v929_v25, %v930_v32  ;;  %v859_v48 = vmax.f32 %v857_v26, %v858_v33 }
  0xe2   : > { %v932_v44 = vrot.slane %v931_v47, 1  ;;  %v860_v60 = vrot.slane %v859_v48, 1 }
  0xe3   : > { %v1389_v13 = vpop.eup %1388 }
  0xe4   : > { %v933_v54 = vmax.f32 %v931_v47, %v932_v44  ;;  %v861_v55 = vmax.f32 %v859_v48, %v860_v60  ;;  %v1043_v14 = vmul.f32 32.0, %v1389_v13  ;;  %v1387_v44 = vld [vmem:[%s1803_s7] ss:$0 sm:$0xff] }
  0xe6   : > { %v963_v58 = vsel %vm962_vm10, %v861_v55, %v961_v36  ;;  %v970_v61 = vsel %vm962_vm10, %v933_v54, %v969_v57  ;;  %v1044_v15 = vsub.f32 1.0, %v1043_v14 }
  0xe7   : > { %v973_v62 = vmax.f32 %v787_v30, %v963_v58  ;;  %v974_v63 = vmax.f32 %v788_v56, %v970_v61 }
  0xe8   : > { %v1045_v16 = vmul.f32 %v1389_v13, %v1044_v15 }
  0xe9   : > { %975 = vst.msk [vmem:[#allocation2] sm:$0xff] %vm442_vm4, %v973_v62 }
  0xea   : > { %976 = vst.msk [vmem:[#allocation2 + $0x8] sm:$0xff] %vm442_vm4, %v974_v63  ;;  %v1046_v17 = vadd.f32 %v1389_v13, %v1045_v16 }
  0xf0   : > { %v980_v1 = vld [vmem:[#allocation2] sm:$0xff] }
  0xf1   : > { %v981_v2 = vld [vmem:[#allocation2 + $0x8] sm:$0xff]  ;;  %v982_v3 = vsub.f32 %v980_v1, %v1677_v34 }
  0xf2   : > { %v983_v38 = vsub.f32 %v981_v2, %v1679_v35 }
  0xf4   : > { %v986_v59 = vpack.c.bf16 %v983_v38, %v982_v3 }
  0xf6   : > { %1255 = vmatmul.msk.bf16.vlgmr.msra.gmra.mxu0 %vm442_vm4, %v986_v59  ;;  %vm1047_vm4 = vweird.f32 %v1389_v13 }
  0xf7   : > { %v1048_v18 = vsel %vm1047_vm4, %v1389_v13, %v1046_v17 }
 0x142   : > { %v1024_v5 = vpop.f32.mrf.mxu1 }
 0x14a   : > { %v1026_v9 = vpop.f32.mrf.mxu1 }
 0x173   : > { %v1004_v0 = vpop.f32.mrf.mxu0 }
 0x174   : > { %v1025_v6 = vadd.f32 %v1024_v5, %v1004_v0 }
 0x176   : > { %v1033_v7 = vadd.f32 %v1385_v4, %v1025_v6 }
 0x178   : > { %v1036_v8 = vsel %vm1035_vm11, %v1033_v7, 0.0 }
 0x179   : > { %1037 = vadd.xlane.f32.xlu1 %v1036_v8 }
 0x17b   : > { %v1006_v10 = vpop.f32.mrf.mxu0 }
 0x17c   : > { %v1027_v34 = vadd.f32 %v1026_v9, %v1006_v10 }
 0x17e   : > { %v1034_v11 = vadd.f32 %v1385_v4, %v1027_v34 }
 0x180   : > { %v1039_v35 = vsel %vm1035_vm11, %v1034_v11, 0.0 }
 0x181   : > { %1040 = vadd.xlane.f32.xlu2 %v1039_v35 }
 0x1ec   : > { %v1038_v19 = vpop.xlane.xlu1 %1037 }
 0x1ed   : > { %v1049_v39 = vmul.f32 %v1048_v18, %v1038_v19 }
 0x1ef   : > { %v1051_v20 = vsub.f32 %v1033_v7, %v1049_v39 }
 0x1f1   : > { %v1053_v21 = vmul.f32 %v1051_v20, %v1051_v20 }
 0x1f3   : > { %v1055_v22 = vsel %vm1035_vm11, %v1053_v21, 0.0 }
 0x1f4   : > { %1056 = vadd.xlane.f32.xlu0 %v1055_v22  ;;  %v1041_v23 = vpop.xlane.xlu2 %1040 }
 0x1f5   : > { %v1050_v24 = vmul.f32 %v1048_v18, %v1041_v23 }
 0x1f7   : > { %v1052_v25 = vsub.f32 %v1034_v11, %v1050_v24 }
 0x1f9   : > { %v1054_v26 = vmul.f32 %v1052_v25, %v1052_v25 }
 0x1fb   : > { %v1058_v27 = vsel %vm1035_vm11, %v1054_v26, 0.0 }
 0x1fc   : > { %1059 = vadd.xlane.f32.xlu2 %v1058_v27 }
 0x267   : > { %v1057_v45 = vpop.xlane.xlu0 %1056 }
 0x268   : > { %v1061_v28 = vmul.f32 %v1057_v45, %v1048_v18 }
 0x26a   : > { %v1063_v29 = vadd.f32 1e-05, %v1061_v28 }
 0x26c   : > { %1390 = vrsqrt.f32 %v1063_v29  ;;  %vm1071_vm13 = vweird.f32 %v1063_v29 }
 0x26f   : > { %v1060_v31 = vpop.xlane.xlu2 %1059 }
 0x270   : > { %v1062_v32 = vmul.f32 %v1060_v31, %v1048_v18 }
 0x272   : > { %v1391_v33 = vpop.eup %1390  ;;  %v1064_v37 = vadd.f32 1e-05, %v1062_v32 }
 0x273   : > { %v1066_v41 = vmul.f32 %v1391_v33, %v1063_v29  ;;  %vm1072_vm12 = vweird.f32 %v1391_v33 }
 0x274   : > { %1392 = vrsqrt.f32 %v1064_v37  ;;  %vm1073_vm14 = vmor %vm1071_vm13, %vm1072_vm12  ;;  %vm1081_vm0 = vweird.f32 %v1064_v37 }
 0x275   : > { %v1067_v42 = vmul.f32 %v1391_v33, %v1066_v41 }
 0x277   : > { %v1068_v43 = vmul.f32 0.5, %v1067_v42 }
 0x279   : > { %v1069_v46 = vsub.f32 1.5, %v1068_v43 }
 0x27a   : > { %v1393_v47 = vpop.eup %1392 }
 0x27b   : > { %v1070_v48 = vmul.f32 %v1391_v33, %v1069_v46  ;;  %v1076_v49 = vmul.f32 %v1393_v47, %v1064_v37  ;;  %vm1082_vm15 = vweird.f32 %v1393_v47 }
 0x27c   : > { %vm1083_vm1 = vmor %vm1081_vm0, %vm1082_vm15 }
 0x27d   : > { %v1074_v51 = vsel %vm1073_vm14, %v1391_v33, %v1070_v48  ;;  %v1077_v52 = vmul.f32 %v1393_v47, %v1076_v49 }
 0x27e   : > { %v1085_v60 = vmul.f32 %v1074_v51, %v1051_v20 }
 0x27f   : > { %v1078_v53 = vmul.f32 0.5, %v1077_v52 }
 0x280   : > { %v1091_v40 = vmul.f32 %v1386_v50, %v1085_v60 }
 0x281   : > { %v1079_v54 = vsub.f32 1.5, %v1078_v53 }
 0x282   : > { %v1097_v55 = vadd.f32 %v1387_v44, %v1091_v40 }
 0x283   : > { %v1080_v30 = vmul.f32 %v1393_v47, %v1079_v54 }
 0x284   : > { %v1101_v56 = vmin.f32 %v1097_v55, 0.0  ;;  %vm1099_vm2 = vcmp.gt.f32.partialorder %v1097_v55, 0.0 }
 0x285   : > { %v1084_v36 = vsel %vm1083_vm1, %v1393_v47, %v1080_v30 }
 0x286   : > { %v1103_v57 = vmul.f32 1.442695, %v1101_v56  ;;  %v1086_v58 = vmul.f32 %v1084_v36, %v1052_v25 }
 0x288   : > { %1394 = vpow2.f32 %v1103_v57  ;;  %v1092_v61 = vmul.f32 %v1386_v50, %v1086_v58 }
 0x28a   : > { %v1098_v62 = vadd.f32 %v1387_v44, %v1092_v61 }
 0x28c   : > { %v1102_v63 = vmin.f32 %v1098_v62, 0.0  ;;  %vm1100_vm3 = vcmp.gt.f32.partialorder %v1098_v62, 0.0 }
 0x28e   : > { %v1395_v1 = vpop.eup %1394  ;;  %v1105_v2 = vmul.f32 1.442695, %v1102_v63 }
 0x28f   : > { %v1257_v3 = vadd.f32 -1.0, %v1395_v1 }
 0x290   : > { %1396 = vpow2.f32 %v1105_v2 }
 0x291   : > { %v1109_v38 = vsel %vm1099_vm2, %v1097_v55, %v1257_v3 }
 0x292   : > { %1111 = vst.msk [vmem:[%s433_s14] sm:$0xff] %vm1035_vm11, %v1109_v38 }
 0x296   : > { %v1397_v59 = vpop.eup %1396 }
 0x297   : > { %v1258_v5 = vadd.f32 -1.0, %v1397_v59 }
 0x299   : > { %v1110_v4 = vsel %vm1100_vm3, %v1098_v62, %v1258_v5 }
 0x29a   : > { %1112 = vst.msk [vmem:[%s433_s14 + $0x8] sm:$0xff] %vm1035_vm11, %v1110_v4 }
 0x29b PF: > { %s18_s29 = sadd.s32 1, %s1420_s29   ;;  %s1853_s27 = smov %s1416_s28 }
 0x29c   : > { %p15_p5 = scmp.ge.s32.totalorder %s18_s29, 4   ;;  %s1854_s28 = smov %s1856_s30 }
 0x29e   :  { %17 = sbr.rel (!%p15_p5) target bundleno = 2 (0x2), region = 96 }

// kernel: simple_mrconv_forward.5
= control target key start
LH: loop header
LB: loop body
LE: loop exit
PB: predicated region body
PF: predicated region fallthrough
CT: control target
= control target key end

     0   :  { %s1511_s27 = smov 0   ;;  %s1513_s28 = smov 0   ;;  %s1837_s0 = inlined_call_operand.vmem [shape: bf16[2,16,16], index: 0, kind: input, shape index: {}]   ;;  %s1838_s1 = inlined_call_operand.vmem [shape: f32[2,16,32], index: 1, kind: input, shape index: {}, may-alias: {1,2}]   ;;  %s1839_s2 = inlined_call_operand.vmem [shape: f32[2,16,32], index: 2, kind: input, shape index: {}, may-alias: {1,2}]   ;;  %s1840_s3 = inlined_call_operand.vmem [shape: bf16[32,16], index: 3, kind: input, shape index: {}]   ;;  %s1841_s4 = inlined_call_operand.vmem [shape: bf16[32,16], index: 4, kind: input, shape index: {}]   ;;  %s1842_s5 = inlined_call_operand.vmem [shape: f32[1,16], index: 5, kind: input, shape index: {}]   ;;  %s1843_s6 = inlined_call_operand.vmem [shape: f32[1,16], index: 6, kind: input, shape index: {}]   ;;  %s1844_s7 = inlined_call_operand.vmem [shape: f32[1,16], index: 7, kind: input, shape index: {}]   ;;  %s1845_s8 = inlined_call_operand.vmem [shape: f32[2,16,16], index: 8, kind: output, shape index: {}]  }
   0x1   :  { %s1515_s29 = smov 0  }
   0x2 LB: > { %s37_s30 = sadd.s32 1, %s1459_s28  ;;  %p1269_p0 = scmp.ge.s32.totalorder %s1463_s29, 1  ;;  %s1463_s29 = sphi %s1515_s29, %s18_s29   ;;  %s1459_s28 = sphi %s1513_s28, %s1895_s28   ;;  %s1455_s27 = sphi %s1511_s27, %s1894_s27  }
   0x3   : > { %p39_p1 = scmp.ge.s32.totalorder %s37_s30, 2  ;;  %p329_p2 = scmp.lt.s32.totalorder %s1463_s29, 3 }
   0x5   : > { %s1897_s30 = smov (%p39_p1, %s37_s30), 0  ;;  %p330_p3 = pnand %p1269_p0, %p329_p2 }
   0x6   : > { %p393_p4 = scmp.lt.s32.totalorder (!%p330_p3), %s1455_s27, 1 }
   0x7   : > { %333 = sbr.rel (%p330_p3) target bundleno = 667 (0x29b), region = 52 }
   0xc   : > { %v452_v0 = vlaneseq  ;;  %s1899_s27 = smov (!%p393_p4, %s1455_s27), 1  ;;  %vm442_vm4 = vcmask 261120  }
   0xd   : > { %s1300_s9 = sshll.u32 %s1899_s27, 3  ;;  %s1536_s13 = sshll.u32 %s1899_s27, 4 }
   0xe   : > { %v453_v1 = vshrl.u32 %v452_v0, 7  ;;  %s403_s12 = scalar_lea.vmem %s1837_s0, %s1300_s9  ;;  %s423_s16 = scalar_lea.vmem %s1839_s2, %s1536_s13 }
   0xf   : > { %v1309_v2 = vld [vmem:[%s403_s12] sm:$0xff]   ;;  %v1542_v38 = vld [vmem:[%s423_s16 + $0x8] sm:$0xff]  ;;  %s413_s19 = scalar_lea.vmem %s1838_s1, %s1536_s13  ;;  %s433_s18 = scalar_lea.vmem %s1845_s8, %s1536_s13 }
  0x10   : > { %1343 = vset.pattern.permute.xlu1 %v453_v1  ;;  %1337 = vset.pattern.permute.xlu0 %v453_v1  ;;  %v1311_v3 = vunpack.c.h.bf16 %v1309_v2  ;;  %v1310_v4 = vunpack.c.l.bf16 %v1309_v2  ;;  %v460_v16 = vadd.s32 8, %v453_v1  ;;  %v1544_v39 = vld [vmem:[%s423_s16] sm:$0xff] }
  0x11   : > { %1349 = vset.pattern.permute.xlu2 %v453_v1 }
  0x12   : > { %v555_v5 = vperm.slane %v1311_v3, 0  ;;  %v568_v6 = vperm.slane %v1311_v3, 1  ;;  %v451_v7 = vperm.slane %v1310_v4, 0  ;;  %v464_v8 = vperm.slane %v1310_v4, 1 }
  0x13   : > { %v477_v9 = vperm.slane %v1310_v4, 2  ;;  %v581_v10 = vperm.slane %v1311_v3, 2  ;;  %v503_v14 = vperm.slane %v1310_v4, 4  ;;  %v607_v15 = vperm.slane %v1311_v3, 4 }
  0x14   : > { %v1344_v11 = vpack.i.bf16 %v568_v6, %v555_v5  ;;  %v1338_v12 = vpack.i.bf16 %v464_v8, %v451_v7  ;;  %v490_v18 = vperm.slane %v1310_v4, 3  ;;  %v594_v19 = vperm.slane %v1311_v3, 3 }
  0x15   : > { %v1350_v13 = vpack.i.bf16 %v581_v10, %v477_v9  ;;  %v1378_v17 = vpack.i.bf16 %v607_v15, %v503_v14  ;;  %v529_v21 = vperm.slane %v1310_v4, 6  ;;  %v633_v22 = vperm.slane %v1311_v3, 6 }
  0x16   : > { %v1373_v20 = vpack.i.bf16 %v594_v19, %v490_v18  ;;  %v542_v24 = vperm.slane %v1310_v4, 7  ;;  %v646_v25 = vperm.slane %v1311_v3, 7  ;;  %v516_v27 = vperm.slane %v1310_v4, 5 }
  0x17   : > { %v1411_v23 = vpack.i.bf16 %v633_v22, %v529_v21  ;;  %v620_v28 = vperm.slane %v1311_v3, 5 }
  0x18   : > { %1345 = vperm.xlu1 %1343, %v1344_v11   ;;  %1339 = vperm.xlu0 %1337, %v1338_v12   ;;  %v1417_v26 = vpack.i.bf16 %v646_v25, %v542_v24 }
  0x19   : > { %1351 = vperm.xlu2 %1349, %v1350_v13   ;;  %v1396_v29 = vpack.i.bf16 %v620_v28, %v516_v27 }
  0x20   : > { %1355 = vset.pattern.permute.xlu1 %v460_v16  ;;  %1379 = vperm.xlu0 %1337, %v1378_v17  }
  0x21   : > { %1367 = vset.pattern.permute.xlu2 %v460_v16 }
  0x28   : > { %1357 = vperm.xlu1 %1355, %v1344_v11   ;;  %1383 = vset.pattern.permute.xlu0 %v460_v16 }
  0x29   : > { %1369 = vperm.xlu2 %1367, %v1350_v13  }
  0x30   : > { %1361 = vset.pattern.permute.xlu1 %v453_v1  ;;  %1385 = vperm.xlu0 %1383, %v1338_v12  }
  0x31   : > { %1374 = vperm.xlu2 %1367, %v1373_v20  }
  0x38   : > { %1363 = vperm.xlu1 %1361, %v1373_v20   ;;  %1412 = vperm.xlu0 %1383, %v1411_v23  }
  0x39   : > { %1395 = vset.pattern.permute.xlu2 %v453_v1 }
  0x40   : > { %1389 = vset.pattern.permute.xlu1 %v460_v16 }
  0x41   : > { %1397 = vperm.xlu2 %1395, %v1396_v29  }
  0x48   : > { %1391 = vperm.xlu1 %1389, %v1378_v17  }
  0x49   : > { %1407 = vperm.xlu2 %1395, %v1411_v23  }
  0x50   : > { %1402 = vperm.xlu1 %1389, %v1396_v29  }
  0x51   : > { %1422 = vset.pattern.permute.xlu2 %v460_v16 }
  0x58   : > { %1416 = vset.pattern.permute.xlu1 %v453_v1 }
  0x59   : > { %1424 = vperm.xlu2 %1422, %v1417_v26  }
  0x60   : > { %1418 = vperm.xlu1 %1416, %v1417_v26  }
  0x73   : > { %v1352_v30 = vpop.permute.xlu2 %1351 }
  0x74   : > { %v1354_v33 = vunpack.i.h.bf16 %v1352_v30  ;;  %v1353_v34 = vunpack.i.l.bf16 %v1352_v30 }
  0x76   : > { %vm679_vm0 = vcmp.gt.f32.partialorder %v1354_v33, 0.5  ;;  %vm663_vm1 = vcmp.gt.f32.partialorder %v1353_v34, 0.5 }
  0x77   : > { %v775_v40 = vsel %vm679_vm0, %v1544_v39, -1e+30  ;;  %v759_v42 = vsel %vm663_vm1, %v1544_v39, -1e+30 }
  0x78   : > { %v880_v46 = vsel %vm442_vm4, %v775_v40, -inf  ;;  %v808_v47 = vsel %vm442_vm4, %v759_v42, -inf }
  0x83   : > { %v1370_v32 = vpop.permute.xlu2 %1369 }
  0x84   : > { %v1372_v35 = vunpack.i.h.bf16 %v1370_v32  ;;  %v1371_v36 = vunpack.i.l.bf16 %v1370_v32 }
  0x86   : > { %vm680_vm2 = vcmp.gt.f32.partialorder %v1372_v35, 0.5  ;;  %vm664_vm3 = vcmp.gt.f32.partialorder %v1371_v36, 0.5 }
  0x87   : > { %v776_v43 = vsel %vm680_vm2, %v1542_v38, -1e+30  ;;  %v760_v44 = vsel %vm664_vm3, %v1542_v38, -1e+30 }
  0x88   : > { %v881_v48 = vsel %vm442_vm4, %v776_v43, -inf  ;;  %v809_v49 = vsel %vm442_vm4, %v760_v44, -inf }
  0x89   : > { %v810_v53 = vmax.f32 %v808_v47, %v809_v49  ;;  %v882_v54 = vmax.f32 %v880_v46, %v881_v48 }
  0x8a   : > { %v1340_v31 = vpop.permute.xlu0 %1339  ;;  %v1346_v37 = vpop.permute.xlu1 %1345 }
  0x8b   : > { %v1375_v51 = vpop.permute.xlu2 %1374  ;;  %v1347_v52 = vunpack.i.l.bf16 %v1346_v37  ;;  %v1348_v56 = vunpack.i.h.bf16 %v1346_v37  ;;  %v811_v60 = vrot.slane %v810_v53, 4  ;;  %v883_v61 = vrot.slane %v882_v54, 4 }
  0x8c   : > { %v1342_v62 = vunpack.i.h.bf16 %v1340_v31  ;;  %v1341_v1 = vunpack.i.l.bf16 %v1340_v31  ;;  %v1377_v12 = vunpack.i.h.bf16 %v1375_v51  ;;  %v1376_v13 = vunpack.i.l.bf16 %v1375_v51  ;;  %v1714_v31 = vld [vmem:[%s413_s19] sm:$0xff] }
  0x8d   : > { %vm1558_vm6 = vcmp.gt.f32.partialorder %v1347_v52, 0.5  ;;  %vm1566_vm8 = vcmp.gt.f32.partialorder %v1348_v56, 0.5  ;;  %v812_v7 = vmax.f32 %v810_v53, %v811_v60  ;;  %v884_v8 = vmax.f32 %v882_v54, %v883_v61  ;;  %443 = vst.msk [vmem:[#allocation2] sm:$0xff] %vm442_vm4, %v1714_v31 }
  0x8e   : > { %v771_v4 = vsel %vm1558_vm6, %v1544_v39, -1e+30  ;;  %v773_v10 = vsel %vm1566_vm8, %v1544_v39, -1e+30  ;;  %vm1584_vm9 = vcmp.gt.f32.partialorder %v1342_v62, 0.5  ;;  %vm1588_vm10 = vcmp.gt.f32.partialorder %v1341_v1, 0.5 }
  0x8f   : > { %v862_v14 = vsel %vm442_vm4, %v771_v4, -inf  ;;  %v871_v22 = vsel %vm442_vm4, %v773_v10, -inf  ;;  %v813_v23 = vrot.slane %v812_v7, 2  ;;  %v885_v24 = vrot.slane %v884_v8, 2 }
  0x90   : > { %v757_v26 = vsel %vm1584_vm9, %v1544_v39, -1e+30  ;;  %v755_v27 = vsel %vm1588_vm10, %v1544_v39, -1e+30  ;;  %vm1611_vm13 = vcmp.gt.f32.partialorder %v1377_v12, 0.5  ;;  %vm1615_vm14 = vcmp.gt.f32.partialorder %v1376_v13, 0.5 }
  0x91   : > { %v1630_v40 = vmax.f32 %v812_v7, %v813_v23  ;;  %v799_v44 = vsel %vm442_vm4, %v757_v26, -inf  ;;  %v762_v46 = vsel %vm1615_vm14, %v1542_v38, -1e+30  ;;  %v1656_v57 = vmax.f32 %v884_v8, %v885_v24 }
  0x92   : > { %v1380_v41 = vpop.permute.xlu0 %1379  ;;  %v818_v0 = vsel %vm442_vm4, %v762_v46, -inf  ;;  %vm950_vm14 = vcmask 1041409  }
  0x93   : > { %v1382_v19 = vunpack.i.h.bf16 %v1380_v41  ;;  %v1381_v20 = vunpack.i.l.bf16 %v1380_v41  ;;  %v790_v41 = vsel %vm442_vm4, %v755_v27, -inf }
  0x95   : > { %vm1622_vm15 = vcmp.gt.f32.partialorder %v1382_v19, 0.5  ;;  %vm1626_vm0 = vcmp.gt.f32.partialorder %v1381_v20, 0.5 }
  0x96   : > { %v763_v51 = vsel %vm1626_vm0, %v1544_v39, -1e+30 }
  0x97   : > { %v826_v62 = vsel %vm442_vm4, %v763_v51, -inf }
  0x9a   : > { %v1358_v45 = vpop.permute.xlu1 %1357 }
  0x9b   : > { %v1359_v50 = vunpack.i.l.bf16 %v1358_v45  ;;  %v1360_v55 = vunpack.i.h.bf16 %v1358_v45  ;;  %v1398_v6 = vpop.permute.xlu2 %1397  ;;  %v778_v45 = vsel %vm1611_vm13, %v1542_v38, -1e+30 }
  0x9c   : > { %v1400_v36 = vunpack.i.h.bf16 %v1398_v6  ;;  %v1399_v37 = vunpack.i.l.bf16 %v1398_v6  ;;  %v890_v63 = vsel %vm442_vm4, %v778_v45, -inf }
  0x9d   : > { %vm1554_vm5 = vcmp.gt.f32.partialorder %v1359_v50, 0.5  ;;  %vm1562_vm7 = vcmp.gt.f32.partialorder %v1360_v55, 0.5  ;;  %v779_v50 = vsel %vm1622_vm15, %v1544_v39, -1e+30 }
  0x9e   : > { %v772_v2 = vsel %vm1554_vm5, %v1542_v38, -1e+30  ;;  %v774_v9 = vsel %vm1562_vm7, %v1542_v38, -1e+30  ;;  %vm1648_vm1 = vcmp.gt.f32.partialorder %v1400_v36, 0.5  ;;  %vm1652_vm2 = vcmp.gt.f32.partialorder %v1399_v37, 0.5 }
  0x9f   : > { %v863_v11 = vsel %vm442_vm4, %v772_v2, -inf  ;;  %v872_v18 = vsel %vm442_vm4, %v774_v9, -inf  ;;  %v898_v61 = vsel %vm442_vm4, %v779_v50, -inf  ;;  %v765_v4 = vsel %vm1652_vm2, %v1544_v39, -1e+30 }
  0xa0   : > { %v864_v25 = vmax.f32 %v862_v14, %v863_v11  ;;  %v873_v29 = vmax.f32 %v871_v22, %v872_v18  ;;  %v835_v21 = vsel %vm442_vm4, %v765_v4, -inf }
  0xa2   : > { %v1386_v58 = vpop.permute.xlu0 %1385  ;;  %v865_v42 = vrot.slane %v864_v25, 4  ;;  %v874_v49 = vrot.slane %v873_v29, 4 }
  0xa3   : > { %v1387_v3 = vunpack.i.l.bf16 %v1386_v58  ;;  %v1388_v5 = vunpack.i.h.bf16 %v1386_v58  ;;  %v1408_v48 = vpop.permute.xlu2 %1407 }
  0xa4   : > { %v866_v58 = vmax.f32 %v864_v25, %v865_v42  ;;  %v1410_v60 = vunpack.i.h.bf16 %v1408_v48  ;;  %v875_v1 = vmax.f32 %v873_v29, %v874_v49  ;;  %v1409_v9 = vunpack.i.l.bf16 %v1408_v48 }
  0xa5   : > { %vm1592_vm11 = vcmp.gt.f32.partialorder %v1387_v3, 0.5  ;;  %vm1597_vm12 = vcmp.gt.f32.partialorder %v1388_v5, 0.5  ;;  %v781_v3 = vsel %vm1648_vm1, %v1544_v39, -1e+30  ;;  %vm952_vm1 = vcmask 1042434  }
  0xa6   : > { %v756_v28 = vsel %vm1592_vm11, %v1542_v38, -1e+30  ;;  %v758_v32 = vsel %vm1597_vm12, %v1542_v38, -1e+30  ;;  %v867_v11 = vrot.slane %v866_v58, 2  ;;  %vm1676_vm6 = vcmp.gt.f32.partialorder %v1410_v60, 0.5 }
  0xa7   : > { %v791_v43 = vsel %vm442_vm4, %v756_v28, -inf  ;;  %v800_v47 = vsel %vm442_vm4, %v758_v32, -inf  ;;  %v907_v20 = vsel %vm442_vm4, %v781_v3, -inf  ;;  %v783_v24 = vsel %vm1676_vm6, %v1544_v39, -1e+30  ;;  %v1716_v32 = vld [vmem:[%s413_s19 + $0x8] sm:$0xff] }
  0xa8   : > { %v792_v53 = vmax.f32 %v790_v41, %v791_v43  ;;  %v801_v59 = vmax.f32 %v799_v44, %v800_v47  ;;  %vm1703_vm9 = vcmp.gt.f32.partialorder %v1409_v9, 0.5  ;;  %v876_v27 = vrot.slane %v875_v1, 2  ;;  %444 = vst.msk [vmem:[#allocation2 + $0x8] sm:$0xff] %vm442_vm4, %v1716_v32  ;;  %v1305_v60 = vld [vmem:[%s1840_s3 + $0x8] sm:$0xff] }
  0xa9   : > { %v916_v37 = vsel %vm442_vm4, %v783_v24, -inf  ;;  %v767_v41 = vsel %vm1703_vm9, %v1544_v39, -1e+30  ;;  %1044 = vmatpush.bf16.msra.mxu1 %v1305_v60  ;;  %v1306_v24 = vld [vmem:[%s1841_s4] sm:$0xff]  ;;  %vm956_vm6 = vcmask 1044484   ;;  %vm962_vm9 = vcmask 1047559  }
  0xaa   : > { %v1364_v33 = vpop.permute.xlu1 %1363  ;;  %v1413_v5 = vpop.permute.xlu0 %1412  ;;  %v793_v7 = vrot.slane %v792_v53, 4  ;;  %v802_v12 = vrot.slane %v801_v59, 4  ;;  %v877_v55 = vmax.f32 %v875_v1, %v876_v27  ;;  %v844_v56 = vsel %vm442_vm4, %v767_v41, -inf }
  0xab   : > { %v1366_v52 = vunpack.i.h.bf16 %v1364_v33  ;;  %v1365_v54 = vunpack.i.l.bf16 %v1364_v33  ;;  %v1415_v16 = vunpack.i.h.bf16 %v1413_v5  ;;  %v1414_v17 = vunpack.i.l.bf16 %v1413_v5 }
  0xac   : > { %v794_v23 = vmax.f32 %v792_v53, %v793_v7  ;;  %v803_v28 = vmax.f32 %v801_v59, %v802_v12  ;;  %v1718_v33 = vmax.f32 %v866_v58, %v867_v11 }
  0xad   : > { %vm1662_vm3 = vcmp.gt.f32.partialorder %v1366_v52, 0.5  ;;  %vm1672_vm5 = vcmp.gt.f32.partialorder %v1365_v54, 0.5  ;;  %vm1721_vm10 = vcmp.gt.f32.partialorder %v1415_v16, 0.5  ;;  %vm1725_vm11 = vcmp.gt.f32.partialorder %v1414_v17, 0.5 }
  0xae   : > { %v777_v15 = vsel %vm1662_vm3, %v1544_v39, -1e+30  ;;  %v761_v19 = vsel %vm1672_vm5, %v1544_v39, -1e+30  ;;  %v795_v45 = vrot.slane %v794_v23, 2  ;;  %v804_v49 = vrot.slane %v803_v28, 2 }
  0xaf   : > { %v889_v29 = vsel %vm442_vm4, %v777_v15, -inf  ;;  %v817_v34 = vsel %vm442_vm4, %v761_v19, -inf  ;;  %v784_v51 = vsel %vm1721_vm10, %v1542_v38, -1e+30  ;;  %v768_v52 = vsel %vm1725_vm11, %v1542_v38, -1e+30 }
  0xb0   : > { %v891_v46 = vmax.f32 %v889_v29, %v890_v63  ;;  %v819_v50 = vmax.f32 %v817_v34, %v818_v0  ;;  %v917_v0 = vsel %vm442_vm4, %v784_v51, -inf  ;;  %v845_v1 = vsel %vm442_vm4, %v768_v52, -inf  ;;  %v1307_v15 = vld [vmem:[%s1841_s4 + $0x8] sm:$0xff] }
  0xb1   : > { %v796_v7 = vmax.f32 %v794_v23, %v795_v45  ;;  %v805_v8 = vmax.f32 %v803_v28, %v804_v49  ;;  %v815_v16 = vrot.slane %v1630_v40, 1  ;;  %v918_v17 = vmax.f32 %v916_v37, %v917_v0  ;;  %1015 = vmatpush.bf16.msra.mxu0 %v1307_v15 }
  0xb2   : > { %v892_v63 = vrot.slane %v891_v46, 4  ;;  %v820_v3 = vrot.slane %v819_v50, 4  ;;  %v846_v18 = vmax.f32 %v844_v56, %v845_v1  ;;  %v984_v19 = vpack.c.bf16 %v1716_v32, %v1714_v31 }
  0xb3   : > { %v797_v25 = vrot.slane %v796_v7, 1  ;;  %v1777_v36 = vmax.f32 %v1630_v40, %v815_v16  ;;  %v887_v37 = vrot.slane %v1656_v57, 1  ;;  %v919_v41 = vrot.slane %v918_v17, 4 }
  0xb4   : > { %v821_v22 = vmax.f32 %v819_v50, %v820_v3  ;;  %v893_v23 = vmax.f32 %v891_v46, %v892_v63  ;;  %vm954_vm5 = vcmask 1043459   ;;  %vm1058_vm10 = vcmask 130048  }
  0xb5   : > { %1016 = vmatpush.bf16.msra.mxu0 %v1306_v24  ;;  %v798_v50 = vmax.f32 %v796_v7, %v797_v25 }
  0xb6   : > { %v822_v45 = vrot.slane %v821_v22, 2  ;;  %v894_v46 = vrot.slane %v893_v23, 2 }
  0xb8   : > { %v895_v60 = vmax.f32 %v893_v23, %v894_v46 }
  0xba   : > { %v1392_v6 = vpop.permute.xlu1 %1391 }
  0xbb   : > { %v1394_v10 = vunpack.i.h.bf16 %v1392_v6  ;;  %v1393_v14 = vunpack.i.l.bf16 %v1392_v6  ;;  %v1304_v6 = vld [vmem:[%s1840_s3] sm:$0xff] }
  0xbc   : > { %1045 = vmatpush.bf16.msra.mxu1 %v1304_v6 }
  0xbd   : > { %vm1683_vm7 = vcmp.gt.f32.partialorder %v1394_v10, 0.5  ;;  %vm1696_vm8 = vcmp.gt.f32.partialorder %v1393_v14, 0.5 }
  0xbe   : > { %v780_v26 = vsel %vm1683_vm7, %v1542_v38, -1e+30  ;;  %v764_v30 = vsel %vm1696_vm8, %v1542_v38, -1e+30  ;;  %vm958_vm7 = vcmask 1045509   ;;  %vm960_vm8 = vcmask 1046534  }
  0xbf   : > { %v899_v42 = vsel %vm442_vm4, %v780_v26, -inf  ;;  %v827_v43 = vsel %vm442_vm4, %v764_v30, -inf  ;;  %v806_v26 = vrot.slane %v805_v8, 1  ;;  %1295 = vmatmul.msk.bf16.vlgmr.msra.gmra.mxu1 %vm442_vm4, %v984_v19 }
  0xc0   : > { %v828_v53 = vmax.f32 %v826_v62, %v827_v43  ;;  %v900_v54 = vmax.f32 %v898_v61, %v899_v42  ;;  %v1425_v62 = vpop.permute.xlu2 %1424  ;;  %v847_v42 = vrot.slane %v846_v18, 4 }
  0xc1   : > { %v1427_v13 = vunpack.i.h.bf16 %v1425_v62  ;;  %v1426_v14 = vunpack.i.l.bf16 %v1425_v62  ;;  %v807_v51 = vmax.f32 %v805_v8, %v806_v26 }
  0xc2   : > { %v1403_v44 = vpop.permute.xlu1 %1402  ;;  %v829_v9 = vrot.slane %v828_v53, 4  ;;  %v901_v10 = vrot.slane %v900_v54, 4 }
  0xc3   : > { %v1405_v47 = vunpack.i.h.bf16 %v1403_v44  ;;  %v1404_v48 = vunpack.i.l.bf16 %v1403_v44  ;;  %vm1768_vm15 = vcmp.gt.f32.partialorder %v1427_v13, 0.5  ;;  %vm1772_vm0 = vcmp.gt.f32.partialorder %v1426_v14, 0.5 }
  0xc4   : > { %v830_v27 = vmax.f32 %v828_v53, %v829_v9  ;;  %v902_v28 = vmax.f32 %v900_v54, %v901_v10  ;;  %v786_v49 = vsel %vm1768_vm15, %v1542_v38, -1e+30  ;;  %v770_v40 = vsel %vm1772_vm0, %v1542_v38, -1e+30 }
  0xc5   : > { %vm686_vm12 = vcmp.gt.f32.partialorder %v1405_v47, 0.5  ;;  %vm670_vm13 = vcmp.gt.f32.partialorder %v1404_v48, 0.5  ;;  %v920_v54 = vmax.f32 %v918_v17, %v919_v41  ;;  %v926_v63 = vsel %vm442_vm4, %v786_v49, -inf }
  0xc6   : > { %v782_v58 = vsel %vm686_vm12, %v1542_v38, -1e+30  ;;  %v766_v59 = vsel %vm670_vm13, %v1542_v38, -1e+30  ;;  %v831_v47 = vrot.slane %v830_v27, 2  ;;  %v903_v48 = vrot.slane %v902_v28, 2 }
  0xc7   : > { %v908_v2 = vsel %vm442_vm4, %v782_v58, -inf  ;;  %v836_v61 = vsel %vm442_vm4, %v766_v59, -inf  ;;  %v823_v59 = vmax.f32 %v821_v22, %v822_v45  ;;  %v854_v0 = vsel %vm442_vm4, %v770_v40, -inf }
  0xc8   : > { %v837_v4 = vmax.f32 %v835_v21, %v836_v61  ;;  %v909_v5 = vmax.f32 %v907_v20, %v908_v2  ;;  %v869_v20 = vrot.slane %v1718_v33, 1  ;;  %v878_v21 = vrot.slane %v877_v55, 1 }
  0xc9   : > { %v832_v2 = vmax.f32 %v830_v27, %v831_v47  ;;  %v904_v61 = vmax.f32 %v902_v28, %v903_v48  ;;  %v824_v8 = vrot.slane %v823_v59, 1  ;;  %v896_v9 = vrot.slane %v895_v60, 1 }
  0xca   : > { %v838_v11 = vrot.slane %v837_v4, 4  ;;  %v910_v12 = vrot.slane %v909_v5, 4  ;;  %v870_v43 = vmax.f32 %v1718_v33, %v869_v20  ;;  %v879_v44 = vmax.f32 %v877_v55, %v878_v21 }
  0xcb   : > { %v848_v55 = vmax.f32 %v846_v18, %v847_v42  ;;  %v833_v14 = vrot.slane %v832_v2, 1  ;;  %v905_v15 = vrot.slane %v904_v61, 1  ;;  %v951_v19 = vsel %vm950_vm14, %v807_v51, %v798_v50 }
  0xcc   : > { %v839_v29 = vmax.f32 %v837_v4, %v838_v11  ;;  %v911_v30 = vmax.f32 %v909_v5, %v910_v12  ;;  %v921_v4 = vrot.slane %v920_v54, 2  ;;  %v888_v12 = vmax.f32 %v1656_v57, %v887_v37 }
  0xcd   : > { %v849_v5 = vrot.slane %v848_v55, 2  ;;  %v964_v13 = vsel %vm950_vm14, %v879_v44, %v870_v43  ;;  %v825_v22 = vmax.f32 %v823_v59, %v824_v8  ;;  %v897_v23 = vmax.f32 %v895_v60, %v896_v9 }
  0xce   : > { %v840_v52 = vrot.slane %v839_v29, 2  ;;  %v912_v53 = vrot.slane %v911_v30, 2  ;;  %v922_v20 = vmax.f32 %v920_v54, %v921_v4  ;;  %v965_v26 = vsel %vm952_vm1, %v888_v12, %v964_v13  ;;  %v788_v54 = vld [vmem:[#allocation2 + $0x8] sm:$0xff] }
  0xcf   : > { %v850_v21 = vmax.f32 %v848_v55, %v849_v5  ;;  %v834_v57 = vmax.f32 %v832_v2, %v833_v14  ;;  %v906_v27 = vmax.f32 %v904_v61, %v905_v15  ;;  %v953_v35 = vsel %vm952_vm1, %v1777_v36, %v951_v19 }
  0xd0   : > { %v841_v38 = vmax.f32 %v839_v29, %v840_v52  ;;  %v913_v62 = vmax.f32 %v911_v30, %v912_v53  ;;  %v923_v37 = vrot.slane %v922_v20, 1  ;;  %v955_v42 = vsel %vm954_vm5, %v825_v22, %v953_v35 }
  0xd1   : > { %v851_v41 = vrot.slane %v850_v21, 1  ;;  %v966_v43 = vsel %vm954_vm5, %v897_v23, %v965_v26  ;;  %v957_v46 = vsel %vm956_vm6, %v834_v57, %v955_v42 }
  0xd2   : > { %v1419_v33 = vpop.permute.xlu1 %1418  ;;  %v842_v16 = vrot.slane %v841_v38, 1  ;;  %v914_v17 = vrot.slane %v913_v62, 1  ;;  %v967_v47 = vsel %vm956_vm6, %v906_v27, %v966_v43  ;;  %v924_v51 = vmax.f32 %v922_v20, %v923_v37 }
  0xd3   : > { %v1421_v56 = vunpack.i.h.bf16 %v1419_v33  ;;  %v1420_v58 = vunpack.i.l.bf16 %v1419_v33  ;;  %v852_v36 = vmax.f32 %v850_v21, %v851_v41  ;;  %v787_v33 = vld [vmem:[#allocation2] sm:$0xff] }
  0xd4   : > { %v843_v28 = vmax.f32 %v841_v38, %v842_v16  ;;  %v915_v29 = vmax.f32 %v913_v62, %v914_v17 }
  0xd5   : > { %vm689_vm2 = vcmp.gt.f32.partialorder %v1421_v56, 0.5  ;;  %vm673_vm3 = vcmp.gt.f32.partialorder %v1420_v58, 0.5 }
  0xd6   : > { %v785_v3 = vsel %vm689_vm2, %v1544_v39, -1e+30  ;;  %v769_v1 = vsel %vm673_vm3, %v1544_v39, -1e+30  ;;  %v959_v48 = vsel %vm958_vm7, %v843_v28, %v957_v46  ;;  %v968_v49 = vsel %vm958_vm7, %v915_v29, %v967_v47  ;;  %v1429_v47 = vld [vmem:[%s1843_s6] ss:$0 sm:$0xff] }
  0xd7   : > { %v925_v6 = vsel %vm442_vm4, %v785_v3, -inf  ;;  %v853_v7 = vsel %vm442_vm4, %v769_v1, -inf  ;;  %v961_v55 = vsel %vm960_vm8, %v852_v36, %v959_v48  ;;  %v969_v56 = vsel %vm960_vm8, %v924_v51, %v968_v49  ;;  %v1428_v1 = vld [vmem:[%s1842_s5] ss:$0 sm:$0xff] }
  0xd8   : > { %v927_v10 = vmax.f32 %v925_v6, %v926_v63  ;;  %v855_v11 = vmax.f32 %v853_v7, %v854_v0 }
  0xda   : > { %v928_v18 = vrot.slane %v927_v10, 4  ;;  %v856_v39 = vrot.slane %v855_v11, 4 }
  0xdc   : > { %v929_v24 = vmax.f32 %v927_v10, %v928_v18  ;;  %v857_v25 = vmax.f32 %v855_v11, %v856_v39  ;;  %v1465_v11 = vmov 16.0  }
  0xdd   : > { %1431 = vrcp.f32 %v1465_v11 }
  0xde   : > { %v930_v30 = vrot.slane %v929_v24, 2  ;;  %v858_v34 = vrot.slane %v857_v25, 2 }
  0xe0   : > { %v931_v44 = vmax.f32 %v929_v24, %v930_v30  ;;  %v859_v45 = vmax.f32 %v857_v25, %v858_v34 }
  0xe2   : > { %v932_v40 = vrot.slane %v931_v44, 1  ;;  %v860_v50 = vrot.slane %v859_v45, 1 }
  0xe3   : > { %v1432_v12 = vpop.eup %1431 }
  0xe4   : > { %v933_v52 = vmax.f32 %v931_v44, %v932_v40  ;;  %v861_v53 = vmax.f32 %v859_v45, %v860_v50  ;;  %v1066_v13 = vmul.f32 16.0, %v1432_v12  ;;  %v1430_v40 = vld [vmem:[%s1844_s7] ss:$0 sm:$0xff] }
  0xe6   : > { %v963_v58 = vsel %vm962_vm9, %v861_v53, %v961_v55  ;;  %v970_v59 = vsel %vm962_vm9, %v933_v52, %v969_v56  ;;  %v1067_v14 = vsub.f32 1.0, %v1066_v13 }
  0xe7   : > { %v973_v60 = vmax.f32 %v787_v33, %v963_v58  ;;  %v974_v63 = vmax.f32 %v788_v54, %v970_v59 }
  0xe8   : > { %v1068_v15 = vmul.f32 %v1432_v12, %v1067_v14 }
  0xe9   : > { %975 = vst.msk [vmem:[#allocation2] sm:$0xff] %vm442_vm4, %v973_v60 }
  0xea   : > { %976 = vst.msk [vmem:[#allocation2 + $0x8] sm:$0xff] %vm442_vm4, %v974_v63  ;;  %v1069_v16 = vadd.f32 %v1432_v12, %v1068_v15 }
  0xf0   : > { %v980_v0 = vld [vmem:[#allocation2] sm:$0xff] }
  0xf1   : > { %v981_v2 = vld [vmem:[#allocation2 + $0x8] sm:$0xff]  ;;  %v982_v61 = vsub.f32 %v980_v0, %v1714_v31 }
  0xf2   : > { %v983_v38 = vsub.f32 %v981_v2, %v1716_v32 }
  0xf4   : > { %v989_v62 = vpack.c.bf16 %v983_v38, %v982_v61 }
  0xf6   : > { %1286 = vmatmul.msk.bf16.vlgmr.msra.gmra.mxu0 %vm442_vm4, %v989_v62  ;;  %vm1070_vm4 = vweird.f32 %v1432_v12 }
  0xf7   : > { %v1071_v17 = vsel %vm1070_vm4, %v1432_v12, %v1069_v16 }
 0x13c   : > { %v1047_v3 = vpop.f32.mrf.mxu1 }
 0x144   : > { %v1049_v8 = vpop.f32.mrf.mxu1 }
 0x173   : > { %v1018_v4 = vpop.f32.mrf.mxu0 }
 0x174   : > { %v1048_v5 = vadd.f32 %v1047_v3, %v1018_v4 }
 0x176   : > { %v1056_v6 = vadd.f32 %v1428_v1, %v1048_v5 }
 0x178   : > { %v1059_v7 = vsel %vm1058_vm10, %v1056_v6, 0.0 }
 0x179   : > { %1060 = vadd.xlane.f32.xlu1 %v1059_v7 }
 0x17b   : > { %v1020_v9 = vpop.f32.mrf.mxu0 }
 0x17c   : > { %v1050_v31 = vadd.f32 %v1049_v8, %v1020_v9 }
 0x17e   : > { %v1057_v10 = vadd.f32 %v1428_v1, %v1050_v31 }
 0x180   : > { %v1062_v32 = vsel %vm1058_vm10, %v1057_v10, 0.0 }
 0x181   : > { %1063 = vadd.xlane.f32.xlu2 %v1062_v32 }
 0x1ec   : > { %v1061_v18 = vpop.xlane.xlu1 %1060 }
 0x1ed   : > { %v1072_v39 = vmul.f32 %v1071_v17, %v1061_v18 }
 0x1ef   : > { %v1074_v19 = vsub.f32 %v1056_v6, %v1072_v39 }
 0x1f1   : > { %v1076_v20 = vmul.f32 %v1074_v19, %v1074_v19 }
 0x1f3   : > { %v1078_v21 = vsel %vm1058_vm10, %v1076_v20, 0.0 }
 0x1f4   : > { %1079 = vadd.xlane.f32.xlu0 %v1078_v21  ;;  %v1064_v22 = vpop.xlane.xlu2 %1063 }
 0x1f5   : > { %v1073_v23 = vmul.f32 %v1071_v17, %v1064_v22 }
 0x1f7   : > { %v1075_v24 = vsub.f32 %v1057_v10, %v1073_v23 }
 0x1f9   : > { %v1077_v25 = vmul.f32 %v1075_v24, %v1075_v24 }
 0x1fb   : > { %v1081_v26 = vsel %vm1058_vm10, %v1077_v25, 0.0 }
 0x1fc   : > { %1082 = vadd.xlane.f32.xlu2 %v1081_v26 }
 0x267   : > { %v1080_v57 = vpop.xlane.xlu0 %1079 }
 0x268   : > { %v1084_v27 = vmul.f32 %v1080_v57, %v1071_v17 }
 0x26a   : > { %v1086_v28 = vadd.f32 1e-05, %v1084_v27 }
 0x26c   : > { %1433 = vrsqrt.f32 %v1086_v28  ;;  %vm1094_vm12 = vweird.f32 %v1086_v28 }
 0x26f   : > { %v1083_v29 = vpop.xlane.xlu2 %1082 }
 0x270   : > { %v1085_v30 = vmul.f32 %v1083_v29, %v1071_v17 }
 0x272   : > { %v1434_v34 = vpop.eup %1433  ;;  %v1087_v35 = vadd.f32 1e-05, %v1085_v30 }
 0x273   : > { %v1089_v37 = vmul.f32 %v1434_v34, %v1086_v28  ;;  %vm1095_vm11 = vweird.f32 %v1434_v34 }
 0x274   : > { %1435 = vrsqrt.f32 %v1087_v35  ;;  %vm1096_vm13 = vmor %vm1094_vm12, %vm1095_vm11  ;;  %vm1104_vm15 = vweird.f32 %v1087_v35 }
 0x275   : > { %v1090_v41 = vmul.f32 %v1434_v34, %v1089_v37 }
 0x277   : > { %v1091_v42 = vmul.f32 0.5, %v1090_v41 }
 0x279   : > { %v1092_v43 = vsub.f32 1.5, %v1091_v42 }
 0x27a   : > { %v1436_v44 = vpop.eup %1435 }
 0x27b   : > { %v1093_v45 = vmul.f32 %v1434_v34, %v1092_v43  ;;  %v1099_v46 = vmul.f32 %v1436_v44, %v1087_v35  ;;  %vm1105_vm14 = vweird.f32 %v1436_v44 }
 0x27c   : > { %vm1106_vm0 = vmor %vm1104_vm15, %vm1105_vm14 }
 0x27d   : > { %v1097_v48 = vsel %vm1096_vm13, %v1434_v34, %v1093_v45  ;;  %v1100_v49 = vmul.f32 %v1436_v44, %v1099_v46 }
 0x27e   : > { %v1108_v50 = vmul.f32 %v1097_v48, %v1074_v19 }
 0x27f   : > { %v1101_v51 = vmul.f32 0.5, %v1100_v49 }
 0x280   : > { %v1114_v36 = vmul.f32 %v1429_v47, %v1108_v50 }
 0x281   : > { %v1102_v52 = vsub.f32 1.5, %v1101_v51 }
 0x282   : > { %v1120_v53 = vadd.f32 %v1430_v40, %v1114_v36 }
 0x283   : > { %v1103_v33 = vmul.f32 %v1436_v44, %v1102_v52 }
 0x284   : > { %v1124_v54 = vmin.f32 %v1120_v53, 0.0  ;;  %vm1122_vm1 = vcmp.gt.f32.partialorder %v1120_v53, 0.0 }
 0x285   : > { %v1107_v55 = vsel %vm1106_vm0, %v1436_v44, %v1103_v33 }
 0x286   : > { %v1126_v56 = vmul.f32 1.442695, %v1124_v54  ;;  %v1109_v58 = vmul.f32 %v1107_v55, %v1075_v24 }
 0x288   : > { %1437 = vpow2.f32 %v1126_v56  ;;  %v1115_v59 = vmul.f32 %v1429_v47, %v1109_v58 }
 0x28a   : > { %v1121_v60 = vadd.f32 %v1430_v40, %v1115_v59 }
 0x28c   : > { %v1125_v63 = vmin.f32 %v1121_v60, 0.0  ;;  %vm1123_vm2 = vcmp.gt.f32.partialorder %v1121_v60, 0.0 }
 0x28e   : > { %v1438_v0 = vpop.eup %1437  ;;  %v1128_v2 = vmul.f32 1.442695, %v1125_v63 }
 0x28f   : > { %v1296_v61 = vadd.f32 -1.0, %v1438_v0 }
 0x290   : > { %1439 = vpow2.f32 %v1128_v2 }
 0x291   : > { %v1132_v38 = vsel %vm1122_vm1, %v1120_v53, %v1296_v61 }
 0x292   : > { %1134 = vst.msk [vmem:[%s433_s18] sm:$0xff] %vm1058_vm10, %v1132_v38 }
 0x296   : > { %v1440_v62 = vpop.eup %1439 }
 0x297   : > { %v1297_v3 = vadd.f32 -1.0, %v1440_v62 }
 0x299   : > { %v1133_v1 = vsel %vm1123_vm2, %v1121_v60, %v1297_v3 }
 0x29a   : > { %1135 = vst.msk [vmem:[%s433_s18 + $0x8] sm:$0xff] %vm1058_vm10, %v1133_v1 }
 0x29b PF: > { %s18_s29 = sadd.s32 1, %s1463_s29   ;;  %s1894_s27 = smov %s1459_s28 }
 0x29c   : > { %p15_p5 = scmp.ge.s32.totalorder %s18_s29, 4   ;;  %s1895_s28 = smov %s1897_s30 }
 0x29e   :  { %17 = sbr.rel (!%p15_p5) target bundleno = 2 (0x2), region = 96 }

</bundles_post_ra>
